<compile_context>
chip_gen: v6e
topology: v6e:2x2x1
jax: 0.10.0
libtpu: 0.0.40
codegen_flags: <defaults>
</compile_context>

<pallas_src>
import jax
import jax.numpy as jnp
from jax.experimental import pallas as pl
from jax.experimental.pallas import tpu as pltpu

# Logical (PyTorch) dims and lane-padded output-feature dims.
D_IN, H1, H2, D_OUT = 784, 200, 100, 10
H1_P, H2_P, D_OUT_P = 256, 128, 128


def mlp_kernel(x_ref, w1_ref, w2_ref, w3_ref, o_ref):
    # All three matmuls + ReLUs fused; padded bf16 weights (~0.5 MiB) stay
    # resident in VMEM for the whole grid.
    x = x_ref[...].astype(jnp.bfloat16)                      # f32 HBM read, bf16 MXU feed
    a1 = jnp.dot(x, w1_ref[...], preferred_element_type=jnp.float32)
    h1 = jnp.maximum(a1, 0.0).astype(jnp.bfloat16)           # ReLU in f32, feed MXU bf16
    a2 = jnp.dot(h1, w2_ref[...], preferred_element_type=jnp.float32)
    h2 = jnp.maximum(a2, 0.0).astype(jnp.bfloat16)
    z = jnp.dot(h2, w3_ref[...], preferred_element_type=jnp.float32)
    o_ref[...] = z.astype(o_ref.dtype)                       # bf16 store (halved writeback)


def prepare_weights(w1, w2, w3):
    """One-time (out of the hot path): pad output-feature dims to lane multiples
    and cast to bf16. w1 keeps K=784 unpadded to match the raw x block.
    Zero padding is numerically exact (no bias, ReLU(0)=0)."""
    w1p = jnp.pad(w1, ((0, 0), (0, H1_P - H1))).astype(jnp.bfloat16)           # (784, 256)
    w2p = jnp.pad(w2, ((0, H1_P - H1), (0, H2_P - H2))).astype(jnp.bfloat16)   # (256, 128)
    w3p = jnp.pad(w3, ((0, H2_P - H2), (0, D_OUT_P - D_OUT))).astype(jnp.bfloat16)  # (128, 128)
    return w1p, w2p, w3p


def mlp_forward(x, w1p, w2p, w3p, batch_tile=None):
    """x: (B, 784) f32. w*p: pre-padded bf16 weights from prepare_weights.
    Returns (B, 10) bf16 logits (f32-accumulated)."""
    B = x.shape[0]
    assert x.shape[1] == D_IN

    if batch_tile is None:
        # >=2 (target 4) parallel grid steps for v7x's 2 TCs, rows rounded to
        # 256, capped at 1024 (keeps v5e under its 16 MiB scoped VMEM default).
        batch_tile = int(max(256, min(1024, 256 * pl.cdiv(pl.cdiv(B, 4), 256))))
    B_pad = batch_tile * pl.cdiv(B, batch_tile)

    xp = x if B_pad == B else jnp.pad(x, ((0, B_pad - B), (0, 0)))

    grid = (B_pad // batch_tile,)

    weight_elems = D_IN * H1_P + H1_P * H2_P + H2_P * D_OUT_P
    cost = pl.CostEstimate(
        flops=2 * B_pad * weight_elems,
        transcendentals=0,
        bytes_accessed=B_pad * D_IN * 4 + B_pad * D_OUT_P * 2 + weight_elems * 2,
    )

    out_p = pl.pallas_call(
        mlp_kernel,
        out_shape=jax.ShapeDtypeStruct((B_pad, D_OUT_P), jnp.bfloat16),
        grid=grid,
        in_specs=[
            # Full-extent last dim (784) is legal even though 784 % 128 != 0.
            pl.BlockSpec((batch_tile, D_IN), lambda i: (i, 0)),
            # Constant index_maps -> grid-invariant blocks -> no per-step re-DMA.
            pl.BlockSpec((D_IN, H1_P), lambda i: (0, 0)),
            pl.BlockSpec((H1_P, H2_P), lambda i: (0, 0)),
            pl.BlockSpec((H2_P, D_OUT_P), lambda i: (0, 0)),
        ],
        out_specs=pl.BlockSpec((batch_tile, D_OUT_P), lambda i: (i, 0)),
        compiler_params=pltpu.CompilerParams(
            dimension_semantics=("parallel",),
        ),
        cost_estimate=cost,
    )(xp, w1p, w2p, w3p)

    # Under jit this slice fuses into the consumer (no extra HBM pass for the
    # padded 118 lanes / padded batch rows).
    return out_p[:B, :D_OUT]


def init_params(key):
    # Deterministic init mimicking nn.Linear's kaiming-uniform (bound = 1/sqrt(fan_in)).
    k1, k2, k3 = jax.random.split(key, 3)
    # PyTorch stores weight as (out, in); transpose to (in, out) for x @ W.
    w1_t = jax.random.uniform(k1, (H1, D_IN), jnp.float32, -1.0, 1.0) / jnp.sqrt(float(D_IN))
    w2_t = jax.random.uniform(k2, (H2, H1), jnp.float32, -1.0, 1.0) / jnp.sqrt(float(H1))
    w3_t = jax.random.uniform(k3, (D_OUT, H2), jnp.float32, -1.0, 1.0) / jnp.sqrt(float(H2))
    return w1_t.T, w2_t.T, w3_t.T


if __name__ == "__main__":
    key = jax.random.PRNGKey(0)
    kx, kp = jax.random.split(key)

    B = 8  # small MNIST-like batch for the correctness demo (padded to one 256-row tile)
    x = jax.random.uniform(kx, (B, D_IN), jnp.float32)  # pixel values in [0, 1)
    w1, w2, w3 = init_params(kp)
    w1p, w2p, w3p = prepare_weights(w1, w2, w3)  # hoisted out of the per-call hot path

    fwd = jax.jit(mlp_forward)
    out = jax.block_until_ready(fwd(x, w1p, w2p, w3p))
    assert out.shape == (B, D_OUT)
    out_f32 = out.astype(jnp.float32)

    # Reference 1: same bf16-input / f32-accumulate path in plain JAX
    # (output additionally rounds to bf16 in the kernel -> modest tolerance).
    xb, w1b, w2b, w3b = (a.astype(jnp.bfloat16) for a in (x, w1, w2, w3))
    r1 = jnp.maximum(jnp.dot(xb, w1b, preferred_element_type=jnp.float32), 0.0).astype(jnp.bfloat16)
    r2 = jnp.maximum(jnp.dot(r1, w2b, preferred_element_type=jnp.float32), 0.0).astype(jnp.bfloat16)
    ref_bf16 = jnp.dot(r2, w3b, preferred_element_type=jnp.float32)
    assert jnp.allclose(out_f32, ref_bf16, atol=2e-2, rtol=2e-2)

    # Reference 2: full-f32 forward (module semantics), loose tolerance for bf16 MXU feed.
    ref_f32 = jnp.maximum(x @ w1, 0.0)
    ref_f32 = jnp.maximum(ref_f32 @ w2, 0.0)
    ref_f32 = ref_f32 @ w3
    assert jnp.allclose(out_f32, ref_f32, atol=5e-2, rtol=5e-2)

    print("KERNEL_OK")
</pallas_src>

<mosaic_0001>
module attributes {stable_mosaic.version = 11 : i64} {
  func.func @mlp_kernel(%arg0: i32, %arg1: memref<256x784xf32, #tpu.memory_space<vmem>>, %arg2: memref<784x256xbf16, #tpu.memory_space<vmem>>, %arg3: memref<256x128xbf16, #tpu.memory_space<vmem>>, %arg4: memref<128x128xbf16, #tpu.memory_space<vmem>>, %arg5: memref<256x128xbf16, #tpu.memory_space<vmem>>) attributes {dimension_semantics = [#tpu.dimension_semantics<parallel>], iteration_bounds = array<i64: 1>, scalar_prefetch = 0 : i64, scratch_operands = 0 : i64, tpu.core_type = #tpu.core_type<tc>, window_params = [{transform_indices = @transform_0, window_bounds = array<i64: 256, 784>}, {pipeline_mode = #tpu.pipeline_mode<synchronous>, transform_indices = @transform_1, window_bounds = array<i64: 784, 256>}, {pipeline_mode = #tpu.pipeline_mode<synchronous>, transform_indices = @transform_2, window_bounds = array<i64: 256, 128>}, {pipeline_mode = #tpu.pipeline_mode<synchronous>, transform_indices = @transform_3, window_bounds = array<i64: 128, 128>}, {transform_indices = @transform_4, window_bounds = array<i64: 256, 128>}]} {
    %c0 = arith.constant 0 : index
    %c0_0 = arith.constant 0 : index
    %0 = vector.load %arg1[%c0, %c0_0] : memref<256x784xf32, #tpu.memory_space<vmem>>, vector<256x784xf32>
    %1 = arith.truncf %0 : vector<256x784xf32> to vector<256x784xbf16>
    %c0_1 = arith.constant 0 : index
    %c0_2 = arith.constant 0 : index
    %2 = vector.load %arg2[%c0_1, %c0_2] : memref<784x256xbf16, #tpu.memory_space<vmem>>, vector<784x256xbf16>
    %cst = arith.constant dense<0.000000e+00> : vector<256x256xf32>
    %3 = tpu.matmul %1, %2, %cst {dimension_numbers = #tpu.dot_dimension_numbers<[1], [0], [0], [1], [0, 0, 1, 1], [], []>} : vector<256x784xbf16>, vector<784x256xbf16>, vector<256x256xf32> -> vector<256x256xf32>
    %cst_3 = arith.constant 0.000000e+00 : f32
    %4 = vector.broadcast %cst_3 : f32 to vector<256x256xf32>
    %5 = arith.maximumf %3, %4 : vector<256x256xf32>
    %6 = arith.truncf %5 : vector<256x256xf32> to vector<256x256xbf16>
    %c0_4 = arith.constant 0 : index
    %c0_5 = arith.constant 0 : index
    %7 = vector.load %arg3[%c0_4, %c0_5] : memref<256x128xbf16, #tpu.memory_space<vmem>>, vector<256x128xbf16>
    %cst_6 = arith.constant dense<0.000000e+00> : vector<256x128xf32>
    %8 = tpu.matmul %6, %7, %cst_6 {dimension_numbers = #tpu.dot_dimension_numbers<[1], [0], [0], [1], [0, 0, 1, 1], [], []>} : vector<256x256xbf16>, vector<256x128xbf16>, vector<256x128xf32> -> vector<256x128xf32>
    %cst_7 = arith.constant 0.000000e+00 : f32
    %9 = vector.broadcast %cst_7 : f32 to vector<256x128xf32>
    %10 = arith.maximumf %8, %9 : vector<256x128xf32>
    %11 = arith.truncf %10 : vector<256x128xf32> to vector<256x128xbf16>
    %c0_8 = arith.constant 0 : index
    %c0_9 = arith.constant 0 : index
    %12 = vector.load %arg4[%c0_8, %c0_9] : memref<128x128xbf16, #tpu.memory_space<vmem>>, vector<128x128xbf16>
    %cst_10 = arith.constant dense<0.000000e+00> : vector<256x128xf32>
    %13 = tpu.matmul %11, %12, %cst_10 {dimension_numbers = #tpu.dot_dimension_numbers<[1], [0], [0], [1], [0, 0, 1, 1], [], []>} : vector<256x128xbf16>, vector<128x128xbf16>, vector<256x128xf32> -> vector<256x128xf32>
    %14 = arith.truncf %13 : vector<256x128xf32> to vector<256x128xbf16>
    %c0_11 = arith.constant 0 : index
    %c0_12 = arith.constant 0 : index
    %15 = vector.load %arg5[%c0_11, %c0_12] : memref<256x128xbf16, #tpu.memory_space<vmem>>, vector<256x128xbf16>
    tpu.vector_store %arg5[%c0_11, %c0_12], %14 {strides = array<i32>} : memref<256x128xbf16, #tpu.memory_space<vmem>>, vector<256x128xbf16>,
    return
  }
  func.func @transform_0(%arg0: i32) -> (i32, i32) {
    %c0_i32 = arith.constant 0 : i32
    %c0_i32_0 = arith.constant 0 : i32
    return %arg0, %c0_i32 : i32, i32
  }
  func.func @transform_1(%arg0: i32) -> (i32, i32) {
    %c0_i32 = arith.constant 0 : i32
    %c0_i32_0 = arith.constant 0 : i32
    %c0_i32_1 = arith.constant 0 : i32
    return %c0_i32, %c0_i32_0 : i32, i32
  }
  func.func @transform_2(%arg0: i32) -> (i32, i32) {
    %c0_i32 = arith.constant 0 : i32
    %c0_i32_0 = arith.constant 0 : i32
    %c0_i32_1 = arith.constant 0 : i32
    return %c0_i32, %c0_i32_0 : i32, i32
  }
  func.func @transform_3(%arg0: i32) -> (i32, i32) {
    %c0_i32 = arith.constant 0 : i32
    %c0_i32_0 = arith.constant 0 : i32
    %c0_i32_1 = arith.constant 0 : i32
    return %c0_i32, %c0_i32_0 : i32, i32
  }
  func.func @transform_4(%arg0: i32) -> (i32, i32) {
    %c0_i32 = arith.constant 0 : i32
    %c0_i32_0 = arith.constant 0 : i32
    return %arg0, %c0_i32 : i32, i32
  }
}

</mosaic_0001>

<bundles_post_ra>
// kernel: mlp_forward.1
= control target key start
LH: loop header
LB: loop body
LE: loop exit
PB: predicated region body
PF: predicated region fallthrough
CT: control target
= control target key end

     0   :  { %vm942_vm0 = vcmask 130048   ;;  %s4762_s1 = inlined_call_operand.vmem [shape: bf16[784,256], index: 1, kind: input, shape index: {}]   ;;  %s4763_s0 = inlined_call_operand.vmem [shape: f32[256,784], index: 0, kind: input, shape index: {}]   ;;  %s4764_s2 = inlined_call_operand.vmem [shape: bf16[256,128], index: 2, kind: input, shape index: {}]   ;;  %s4765_s3 = inlined_call_operand.vmem [shape: bf16[128,128], index: 3, kind: input, shape index: {}]   ;;  %s4766_s4 = inlined_call_operand.vmem [shape: bf16[256,128], index: 4, kind: output, shape index: {}]  }
   0x1   :  { %v3099_v0 = vld [vmem:[%s4762_s1 + $0x74] ss:$8 sps:$4 sm:$0xff]   ;;  %v3103_v2 = vld [vmem:[%s4762_s1 + $0x70] ss:$8 sps:$4 sm:$0xff]   ;;  %v3105_v4 = vld [vmem:[%s4762_s1 + $0x64] ss:$8 sps:$4 sm:$0xff]  }
   0x2   :  { %v3101_v1 = vld [vmem:[%s4762_s1 + $0x174] ss:$8 sps:$4 sm:$0xff]   ;;  %991 = vmatprep.subr.bf16.mxu0 %v3099_v0  ;;  %v3104_v3 = vld [vmem:[%s4762_s1 + $0x170] ss:$8 sps:$4 sm:$0xff]   ;;  %v3107_v5 = vld [vmem:[%s4762_s1 + $0x164] ss:$8 sps:$4 sm:$0xff]  }
   0x3   :  { %1184 = vmatprep.subr.bf16.mxu1 %v3101_v1  ;;  %992 = vmatpush1.bf16.msra.mxu0 %v3103_v2  ;;  %v3109_v6 = vld [vmem:[%s4762_s1 + $0x60] ss:$8 sps:$4 sm:$0xff]   ;;  %v3111_v8 = vld [vmem:[%s4762_s1 + $0x54] ss:$8 sps:$4 sm:$0xff]   ;;  %v3115_v10 = vld [vmem:[%s4762_s1 + $0x50] ss:$8 sps:$4 sm:$0xff]  }
   0x4   :  { %1185 = vmatpush1.bf16.msra.mxu1 %v3104_v3  ;;  %993 = vmatprep.subr.bf16.mxu0 %v3105_v4  ;;  %v3110_v7 = vld [vmem:[%s4762_s1 + $0x160] ss:$8 sps:$4 sm:$0xff]   ;;  %v3113_v9 = vld [vmem:[%s4762_s1 + $0x154] ss:$8 sps:$4 sm:$0xff]   ;;  %v3116_v11 = vld [vmem:[%s4762_s1 + $0x150] ss:$8 sps:$4 sm:$0xff]  }
   0x5   :  { %1186 = vmatprep.subr.bf16.mxu1 %v3107_v5  ;;  %v3117_v12 = vld [vmem:[%s4762_s1 + $0x44] ss:$8 sps:$4 sm:$0xff]   ;;  %v3121_v14 = vld [vmem:[%s4762_s1 + $0x40] ss:$8 sps:$4 sm:$0xff]   ;;  %v3123_v16 = vld [vmem:[%s4762_s1 + $0x34] ss:$8 sps:$4 sm:$0xff]  }
   0x6   :  { %v3119_v13 = vld [vmem:[%s4762_s1 + $0x144] ss:$8 sps:$4 sm:$0xff]   ;;  %v3122_v15 = vld [vmem:[%s4762_s1 + $0x140] ss:$8 sps:$4 sm:$0xff]   ;;  %v3125_v17 = vld [vmem:[%s4762_s1 + $0x134] ss:$8 sps:$4 sm:$0xff]  }
   0x7   :  { %994 = vmatpush1.bf16.msra.mxu0 %v3109_v6  ;;  %v3127_v18 = vld [vmem:[%s4762_s1 + $0x30] ss:$8 sps:$4 sm:$0xff]   ;;  %v3129_v20 = vld [vmem:[%s4762_s1 + $0x24] ss:$8 sps:$4 sm:$0xff]   ;;  %v3133_v22 = vld [vmem:[%s4762_s1 + $0x20] ss:$8 sps:$4 sm:$0xff]  }
   0x8   :  { %1187 = vmatpush1.bf16.msra.mxu1 %v3110_v7  ;;  %995 = vmatprep.subr.bf16.mxu0 %v3111_v8  ;;  %v3128_v19 = vld [vmem:[%s4762_s1 + $0x130] ss:$8 sps:$4 sm:$0xff]   ;;  %v3131_v21 = vld [vmem:[%s4762_s1 + $0x124] ss:$8 sps:$4 sm:$0xff]   ;;  %v3134_v23 = vld [vmem:[%s4762_s1 + $0x120] ss:$8 sps:$4 sm:$0xff]  }
   0x9   :  { %1188 = vmatprep.subr.bf16.mxu1 %v3113_v9  ;;  %v3135_v24 = vld [vmem:[%s4762_s1 + $0x14] ss:$8 sps:$4 sm:$0xff]   ;;  %v3139_v26 = vld [vmem:[%s4762_s1 + $0x10] ss:$8 sps:$4 sm:$0xff]   ;;  %v3141_v28 = vld [vmem:[%s4762_s1 + $0x4] ss:$8 sps:$4 sm:$0xff]  }
   0xa   :  { %v3137_v25 = vld [vmem:[%s4762_s1 + $0x114] ss:$8 sps:$4 sm:$0xff]   ;;  %v3140_v27 = vld [vmem:[%s4762_s1 + $0x110] ss:$8 sps:$4 sm:$0xff]   ;;  %v3143_v29 = vld [vmem:[%s4762_s1 + $0x104] ss:$8 sps:$4 sm:$0xff]  }
   0xb   :  { %996 = vmatpush1.bf16.msra.mxu0 %v3115_v10  ;;  %v3145_v30 = vld [vmem:[%s4762_s1] ss:$8 sps:$4 sm:$0xff]   ;;  %v3147_v32 = vld [vmem:[%s4762_s1 + $0xf4] ss:$8 sps:$4 sm:$0xff]   ;;  %v3151_v34 = vld [vmem:[%s4762_s1 + $0xf0] ss:$8 sps:$4 sm:$0xff]  }
   0xc   :  { %1189 = vmatpush1.bf16.msra.mxu1 %v3116_v11  ;;  %997 = vmatprep.subr.bf16.mxu0 %v3117_v12  ;;  %v3146_v31 = vld [vmem:[%s4762_s1 + $0x100] ss:$8 sps:$4 sm:$0xff]   ;;  %v3149_v33 = vld [vmem:[%s4762_s1 + $0x1f4] ss:$8 sps:$4 sm:$0xff]   ;;  %v3152_v35 = vld [vmem:[%s4762_s1 + $0x1f0] ss:$8 sps:$4 sm:$0xff]  }
   0xd   :  { %1190 = vmatprep.subr.bf16.mxu1 %v3119_v13  ;;  %v3153_v36 = vld [vmem:[%s4762_s1 + $0xe4] ss:$8 sps:$4 sm:$0xff]   ;;  %v3157_v38 = vld [vmem:[%s4762_s1 + $0xe0] ss:$8 sps:$4 sm:$0xff]   ;;  %v3159_v40 = vld [vmem:[%s4762_s1 + $0xd4] ss:$8 sps:$4 sm:$0xff]  }
   0xe   :  { %v3155_v37 = vld [vmem:[%s4762_s1 + $0x1e4] ss:$8 sps:$4 sm:$0xff]   ;;  %v3158_v39 = vld [vmem:[%s4762_s1 + $0x1e0] ss:$8 sps:$4 sm:$0xff]   ;;  %v3161_v41 = vld [vmem:[%s4762_s1 + $0x1d4] ss:$8 sps:$4 sm:$0xff]  }
   0xf   :  { %998 = vmatpush1.bf16.msra.mxu0 %v3121_v14  ;;  %v3163_v42 = vld [vmem:[%s4762_s1 + $0xd0] ss:$8 sps:$4 sm:$0xff]   ;;  %v3165_v44 = vld [vmem:[%s4762_s1 + $0xc4] ss:$8 sps:$4 sm:$0xff]   ;;  %v3169_v50 = vld [vmem:[%s4762_s1 + $0xc0] ss:$8 sps:$4 sm:$0xff]  }
  0x10   :  { %1191 = vmatpush1.bf16.msra.mxu1 %v3122_v15  ;;  %999 = vmatprep.subr.bf16.mxu0 %v3123_v16  ;;  %v3164_v43 = vld [vmem:[%s4762_s1 + $0x1d0] ss:$8 sps:$4 sm:$0xff]   ;;  %v3167_v45 = vld [vmem:[%s4762_s1 + $0x1c4] ss:$8 sps:$4 sm:$0xff]   ;;  %v3170_v51 = vld [vmem:[%s4762_s1 + $0x1c0] ss:$8 sps:$4 sm:$0xff]  }
  0x11   :  { %1192 = vmatprep.subr.bf16.mxu1 %v3125_v17  ;;  %v19_v46 = vld [vmem:[%s4763_s0 + $0x8] sm:$0xff]  ;;  %v26_v47 = vld [vmem:[%s4763_s0 + $0x40] sm:$0xff]  ;;  %v21_v48 = vld [vmem:[%s4763_s0 + $0x18] sm:$0xff] }
  0x12   :  { %v28_v49 = vld [vmem:[%s4763_s0 + $0x50] sm:$0xff]  ;;  %v243_v53 = vpack.c.bf16 %v26_v47, %v19_v46  ;;  %v3177_v58 = vld [vmem:[%s4762_s1 + $0xa4] ss:$8 sps:$4 sm:$0xff]   ;;  %v3181_v60 = vld [vmem:[%s4762_s1 + $0xa0] ss:$8 sps:$4 sm:$0xff]  }
  0x13   :  { %1000 = vmatpush1.bf16.msra.mxu0 %v3127_v18  ;;  %v3171_v52 = vld [vmem:[%s4762_s1 + $0xb4] ss:$8 sps:$4 sm:$0xff]   ;;  %v245_v54 = vpack.c.bf16 %v28_v49, %v21_v48  ;;  %v3175_v56 = vld [vmem:[%s4762_s1 + $0xb0] ss:$8 sps:$4 sm:$0xff]   ;;  %v3179_v59 = vld [vmem:[%s4762_s1 + $0x1a4] ss:$8 sps:$4 sm:$0xff]  }
  0x14   :  { %1193 = vmatpush1.bf16.msra.mxu1 %v3128_v19  ;;  %1001 = vmatprep.subr.bf16.mxu0 %v3129_v20  ;;  %v3173_v55 = vld [vmem:[%s4762_s1 + $0x1b4] ss:$8 sps:$4 sm:$0xff]   ;;  %v3176_v57 = vld [vmem:[%s4762_s1 + $0x1b0] ss:$8 sps:$4 sm:$0xff]   ;;  %v3182_v61 = vld [vmem:[%s4762_s1 + $0x1a0] ss:$8 sps:$4 sm:$0xff]  }
  0x15   :  { %1194 = vmatprep.subr.bf16.mxu1 %v3131_v21  ;;  %1023 = vmatprep.mubr.bf16.mxu0 %v243_v53  ;;  %v3183_v62 = vld [vmem:[%s4762_s1 + $0x94] ss:$8 sps:$4 sm:$0xff]   ;;  %v3187_v0 = vld [vmem:[%s4762_s1 + $0x90] ss:$8 sps:$4 sm:$0xff]   ;;  %v3189_v2 = vld [vmem:[%s4762_s1 + $0x84] ss:$8 sps:$4 sm:$0xff]  }
  0x16   :  { %1216 = vmatprep.mubr.bf16.mxu1 %v245_v54  ;;  %v3185_v63 = vld [vmem:[%s4762_s1 + $0x194] ss:$8 sps:$4 sm:$0xff]   ;;  %v3188_v1 = vld [vmem:[%s4762_s1 + $0x190] ss:$8 sps:$4 sm:$0xff]   ;;  %v3191_v3 = vld [vmem:[%s4762_s1 + $0x184] ss:$8 sps:$4 sm:$0xff]  }
  0x17   :  { %1002 = vmatpush1.bf16.msra.mxu0 %v3133_v22  ;;  %v3193_v4 = vld [vmem:[%s4762_s1 + $0x80] ss:$8 sps:$4 sm:$0xff]   ;;  %v25_v7 = vld [vmem:[%s4763_s0 + $0x38] sm:$0xff]  ;;  %v20_v8 = vld [vmem:[%s4763_s0 + $0x10] sm:$0xff] }
  0x18   :  { %1195 = vmatpush1.bf16.msra.mxu1 %v3134_v23  ;;  %1003 = vmatprep.subr.bf16.mxu0 %v3135_v24  ;;  %v3194_v5 = vld [vmem:[%s4762_s1 + $0x180] ss:$8 sps:$4 sm:$0xff]   ;;  %v3197_v10 = vld [vmem:[%s4762_s1 + $0x274] ss:$8 sps:$4 sm:$0xff]   ;;  %v3195_v17 = vld [vmem:[%s4762_s1 + $0x270] ss:$8 sps:$4 sm:$0xff]  }
  0x19   :  { %1196 = vmatprep.subr.bf16.mxu1 %v3137_v25  ;;  %v18_v6 = vld [vmem:[%s4763_s0] sm:$0xff]  ;;  %v27_v9 = vld [vmem:[%s4763_s0 + $0x48] sm:$0xff]  ;;  %v33_v11 = vld [vmem:[%s4763_s0 + $0x78] sm:$0xff] }
  0x1a   :  { %v40_v12 = vld [vmem:[%s4763_s0 + $0xb0] sm:$0xff]  ;;  %v35_v13 = vld [vmem:[%s4763_s0 + $0x88] sm:$0xff]  ;;  %v42_v14 = vld [vmem:[%s4763_s0 + $0xc0] sm:$0xff]  ;;  %v242_v15 = vpack.c.bf16 %v25_v7, %v18_v6  ;;  %v244_v16 = vpack.c.bf16 %v27_v9, %v20_v8 }
  0x1b   :  { %1004 = vmatpush1.bf16.msra.mxu0 %v3139_v26  ;;  %v250_v18 = vpack.c.bf16 %v40_v12, %v33_v11  ;;  %v252_v19 = vpack.c.bf16 %v42_v14, %v35_v13  ;;  %v3200_v20 = vld [vmem:[%s4762_s1 + $0x264] ss:$8 sps:$4 sm:$0xff]   ;;  %v32_v21 = vld [vmem:[%s4763_s0 + $0x70] sm:$0xff]  ;;  %v41_v24 = vld [vmem:[%s4763_s0 + $0xb8] sm:$0xff] }
  0x1c   :  { %1197 = vmatpush1.bf16.msra.mxu1 %v3140_v27  ;;  %1005 = vmatprep.subr.bf16.mxu0 %v3141_v28  ;;  %v39_v22 = vld [vmem:[%s4763_s0 + $0xa8] sm:$0xff]  ;;  %v34_v23 = vld [vmem:[%s4763_s0 + $0x80] sm:$0xff]  ;;  %v49_v28 = vld [vmem:[%s4763_s0 + $0xf8] sm:$0xff] }
  0x1d   :  { %1198 = vmatprep.subr.bf16.mxu1 %v3143_v29  ;;  %v3198_v25 = vld [vmem:[%s4762_s1 + $0x260] ss:$8 sps:$4 sm:$0xff]   ;;  %v56_v29 = vld [vmem:[%s4763_s0 + $0x130] sm:$0xff]  ;;  %v3212_v54 = vld [vmem:[%s4762_s1 + $0x224] ss:$8 sps:$4 sm:$0xff]  }
  0x1e   :  { %v47_v26 = vld [vmem:[%s4763_s0 + $0xe8] sm:$0xff]  ;;  %v54_v27 = vld [vmem:[%s4763_s0 + $0x120] sm:$0xff]  ;;  %v3209_v46 = vld [vmem:[%s4762_s1 + $0x234] ss:$8 sps:$4 sm:$0xff]  }
  0x1f   :  { %1006 = vmatpush1.bf16.msra.mxu0 %v3145_v30  ;;  %v3203_v30 = vld [vmem:[%s4762_s1 + $0x254] ss:$8 sps:$4 sm:$0xff]   ;;  %v67_v53 = vld [vmem:[%s4763_s0 + $0x188] sm:$0xff]  ;;  %v98_v12 = vld [vmem:[%s4763_s0 + $0x280] sm:$0xff] }
  0x20   :  { %1199 = vmatpush1.bf16.msra.mxu1 %v3146_v31  ;;  %1007 = vmatprep.subr.bf16.mxu0 %v3147_v32  ;;  %v249_v31 = vpack.c.bf16 %v39_v22, %v32_v21  ;;  %v251_v32 = vpack.c.bf16 %v41_v24, %v34_v23  ;;  %v3218_v6 = vld [vmem:[%s4762_s1 + $0x204] ss:$8 sps:$4 sm:$0xff]   ;;  %v76_v7 = vld [vmem:[%s4763_s0 + $0x1d0] sm:$0xff]  ;;  %v89_v9 = vld [vmem:[%s4763_s0 + $0x238] sm:$0xff] }
  0x21   :  { %1200 = vmatprep.subr.bf16.mxu1 %v3149_v33  ;;  %v257_v33 = vpack.c.bf16 %v54_v27, %v47_v26  ;;  %v83_v8 = vld [vmem:[%s4763_s0 + $0x208] sm:$0xff]  ;;  %v3221_v14 = vld [vmem:[%s4762_s1 + $0x2f4] ss:$8 sps:$4 sm:$0xff]   ;;  %v90_v23 = vld [vmem:[%s4763_s0 + $0x240] sm:$0xff] }
  0x22   :  { %v91_v11 = vld [vmem:[%s4763_s0 + $0x248] sm:$0xff]  ;;  %v97_v24 = vld [vmem:[%s4763_s0 + $0x278] sm:$0xff]  ;;  %v110_v26 = vld [vmem:[%s4763_s0 + $0x2e0] sm:$0xff] }
  0x23   :  { %1008 = vmatpush2.bf16.msra.mxu0 %v3151_v34  ;;  %v259_v34 = vpack.c.bf16 %v56_v29, %v49_v28  ;;  %v3216_v13 = vld [vmem:[%s4762_s1 + $0x200] ss:$8 sps:$4 sm:$0xff]   ;;  %v3224_v22 = vld [vmem:[%s4762_s1 + $0x2e4] ss:$8 sps:$4 sm:$0xff]   ;;  %v105_v27 = vld [vmem:[%s4763_s0 + $0x2b8] sm:$0xff] }
  0x24   :  { %1201 = vmatpush2.bf16.msra.mxu1 %v3152_v35  ;;  %1009 = vmatprep.subr.bf16.mxu0 %v3153_v36  ;;  %v3201_v35 = vld [vmem:[%s4762_s1 + $0x250] ss:$8 sps:$4 sm:$0xff]   ;;  %v46_v36 = vld [vmem:[%s4763_s0 + $0xe0] sm:$0xff]  ;;  %v95_v21 = vld [vmem:[%s4763_s0 + $0x268] sm:$0xff] }
  0x25   :  { %1202 = vmatprep.subr.bf16.mxu1 %v3155_v37  ;;  %v53_v37 = vld [vmem:[%s4763_s0 + $0x118] sm:$0xff]  ;;  %v112_v28 = vld [vmem:[%s4763_s0 + $0x2f0] sm:$0xff]  ;;  %v3222_v29 = vld [vmem:[%s4762_s1 + $0x2e0] ss:$8 sps:$4 sm:$0xff]  }
  0x26   :  { %v256_v47 = vpack.c.bf16 %v53_v37, %v46_v36  ;;  %v102_v36 = vld [vmem:[%s4763_s0 + $0x2a0] sm:$0xff]  ;;  %v109_v37 = vld [vmem:[%s4763_s0 + $0x2d8] sm:$0xff] }
  0x27   :  { %1010 = vmatpush2.bf16.msra.mxu0 %v3157_v38  ;;  %v3206_v38 = vld [vmem:[%s4762_s1 + $0x244] ss:$8 sps:$4 sm:$0xff]  }
  0x28   :  { %1203 = vmatpush2.bf16.msra.mxu1 %v3158_v39  ;;  %1011 = vmatprep.subr.bf16.mxu0 %v3159_v40  ;;  %v48_v39 = vld [vmem:[%s4763_s0 + $0xf0] sm:$0xff]  ;;  %v55_v40 = vld [vmem:[%s4763_s0 + $0x128] sm:$0xff] }
  0x29   :  { %1204 = vmatprep.subr.bf16.mxu1 %v3161_v41  ;;  %v61_v41 = vld [vmem:[%s4763_s0 + $0x158] sm:$0xff]  ;;  %v258_v48 = vpack.c.bf16 %v55_v40, %v48_v39  ;;  %v104_v39 = vld [vmem:[%s4763_s0 + $0x2b0] sm:$0xff]  ;;  %v111_v40 = vld [vmem:[%s4763_s0 + $0x2e8] sm:$0xff] }
  0x2b   :  { %1012 = vmatpush2.bf16.msra.mxu0 %v3163_v42  ;;  %v68_v42 = vld [vmem:[%s4763_s0 + $0x190] sm:$0xff] }
  0x2c   :  { %1205 = vmatpush2.bf16.msra.mxu1 %v3164_v43  ;;  %1013 = vmatprep.subr.bf16.mxu0 %v3165_v44  ;;  %v63_v43 = vld [vmem:[%s4763_s0 + $0x168] sm:$0xff]  ;;  %v70_v44 = vld [vmem:[%s4763_s0 + $0x1a0] sm:$0xff]  ;;  %v264_v49 = vpack.c.bf16 %v68_v42, %v61_v41  ;;  %v117_v41 = vld [vmem:[%s4763_s0 + $0x318] sm:$0xff] }
  0x2d   :  { %1206 = vmatprep.subr.bf16.mxu1 %v3167_v45  ;;  %v3204_v45 = vld [vmem:[%s4762_s1 + $0x240] ss:$8 sps:$4 sm:$0xff]   ;;  %v124_v42 = vld [vmem:[%s4763_s0 + $0x350] sm:$0xff] }
  0x2f   :  { %1014 = vmatpush2.bf16.msra.mxu0 %v3169_v50  ;;  %v266_v50 = vpack.c.bf16 %v70_v44, %v63_v43  ;;  %v119_v43 = vld [vmem:[%s4763_s0 + $0x328] sm:$0xff]  ;;  %v126_v44 = vld [vmem:[%s4763_s0 + $0x360] sm:$0xff] }
  0x30   :  { %1207 = vmatpush2.bf16.msra.mxu1 %v3170_v51  ;;  %1015 = vmatprep.subr.bf16.mxu0 %v3171_v52  ;;  %v3207_v51 = vld [vmem:[%s4762_s1 + $0x230] ss:$8 sps:$4 sm:$0xff]  }
  0x31   :  { %1208 = vmatprep.subr.bf16.mxu1 %v3173_v55  ;;  %v60_v52 = vld [vmem:[%s4763_s0 + $0x150] sm:$0xff]  ;;  %v62_v55 = vld [vmem:[%s4763_s0 + $0x160] sm:$0xff] }
  0x33   :  { %1016 = vmatpush2.bf16.msra.mxu0 %v3175_v56  ;;  %v69_v56 = vld [vmem:[%s4763_s0 + $0x198] sm:$0xff] }
  0x34   :  { %1209 = vmatpush2.bf16.msra.mxu1 %v3176_v57  ;;  %1017 = vmatprep.subr.bf16.mxu0 %v3177_v58  ;;  %v75_v57 = vld [vmem:[%s4763_s0 + $0x1c8] sm:$0xff]  ;;  %v82_v58 = vld [vmem:[%s4763_s0 + $0x200] sm:$0xff] }
  0x35   :  { %1210 = vmatprep.subr.bf16.mxu1 %v3179_v59  ;;  %v77_v59 = vld [vmem:[%s4763_s0 + $0x1d8] sm:$0xff] }
  0x37   :  { %1018 = vmatpush2.bf16.msra.mxu0 %v3181_v60  ;;  %v84_v60 = vld [vmem:[%s4763_s0 + $0x210] sm:$0xff] }
  0x38   :  { %1211 = vmatpush2.bf16.msra.mxu1 %v3182_v61  ;;  %1019 = vmatprep.subr.bf16.mxu0 %v3183_v62  ;;  %v3210_v61 = vld [vmem:[%s4762_s1 + $0x220] ss:$8 sps:$4 sm:$0xff]   ;;  %v3215_v62 = vld [vmem:[%s4762_s1 + $0x214] ss:$8 sps:$4 sm:$0xff]  }
  0x39   :  { %1212 = vmatprep.subr.bf16.mxu1 %v3185_v63  ;;  %v263_v63 = vpack.c.bf16 %v67_v53, %v60_v52  ;;  %v3236_v52 = vld [vmem:[%s4762_s1 + $0x2a4] ss:$8 sps:$4 sm:$0xff]   ;;  %v116_v53 = vld [vmem:[%s4763_s0 + $0x310] sm:$0xff] }
  0x3b   :  { %1020 = vmatpush2.bf16.msra.mxu0 %v3187_v0  ;;  %v265_v0 = vpack.c.bf16 %v69_v56, %v62_v55  ;;  %v118_v55 = vld [vmem:[%s4763_s0 + $0x320] sm:$0xff]  ;;  %v125_v56 = vld [vmem:[%s4763_s0 + $0x358] sm:$0xff] }
  0x3c   :  { %1213 = vmatpush2.bf16.msra.mxu1 %v3188_v1  ;;  %1021 = vmatprep.subr.bf16.mxu0 %v3189_v2  ;;  %v271_v1 = vpack.c.bf16 %v82_v58, %v75_v57  ;;  %v273_v2 = vpack.c.bf16 %v84_v60, %v77_v59  ;;  %v131_v57 = vld [vmem:[%s4763_s0 + $0x388] sm:$0xff]  ;;  %v138_v58 = vld [vmem:[%s4763_s0 + $0x3c0] sm:$0xff]  ;;  %v133_v59 = vld [vmem:[%s4763_s0 + $0x398] sm:$0xff] }
  0x3d   :  { %1214 = vmatprep.subr.bf16.mxu1 %v3191_v3  ;;  %v3213_v3 = vld [vmem:[%s4762_s1 + $0x210] ss:$8 sps:$4 sm:$0xff]  }
  0x3e   :  { %v140_v60 = vld [vmem:[%s4763_s0 + $0x3d0] sm:$0xff] }
  0x3f   :  { %1022 = vmatpush2.bf16.msra.mxu0 %v3193_v4  ;;  %v74_v4 = vld [vmem:[%s4763_s0 + $0x1c0] sm:$0xff] }
  0x40   :  { %1215 = vmatpush2.bf16.msra.mxu1 %v3194_v5  ;;  %1377 = vmatprep.subr.bf16.mxu0 %v3197_v10  ;;  %v81_v5 = vld [vmem:[%s4763_s0 + $0x1f8] sm:$0xff] }
  0x41   :  { %3066 = vmatprep.subr.bf16.mxu1 %v3197_v10  ;;  %v96_v10 = vld [vmem:[%s4763_s0 + $0x270] sm:$0xff] }
  0x42   :  { %1024 = vmatmul.mubr.bf16.vlgmr.msra.gmra.mxu0 %v242_v15  ;;  %v270_v15 = vpack.c.bf16 %v81_v5, %v74_v4  ;;  %v3242_v4 = vld [vmem:[%s4762_s1 + $0x284] ss:$8 sps:$4 sm:$0xff]  }
  0x43   :  { %1217 = vmatmul.mubr.bf16.vlgmr.msra.gmra.mxu1 %v244_v16  ;;  %1033 = vmatprep.mubr.bf16.mxu0 %v250_v18  ;;  %v272_v16 = vpack.c.bf16 %v83_v8, %v76_v7  ;;  %v280_v18 = vpack.c.bf16 %v98_v12, %v91_v11  ;;  %v130_v5 = vld [vmem:[%s4763_s0 + $0x380] sm:$0xff]  ;;  %v132_v7 = vld [vmem:[%s4763_s0 + $0x390] sm:$0xff]  ;;  %v139_v8 = vld [vmem:[%s4763_s0 + $0x3c8] sm:$0xff] }
  0x44   :  { %3082 = vmatpush1.bf16.msra.mxu1 %v3195_v17  ;;  %1226 = vmatprep.mubr.bf16.mxu1 %v252_v19  ;;  %v3219_v19 = vld [vmem:[%s4762_s1 + $0x2f0] ss:$8 sps:$4 sm:$0xff]   ;;  %v147_v11 = vld [vmem:[%s4763_s0 + $0x408] sm:$0xff]  ;;  %v154_v12 = vld [vmem:[%s4763_s0 + $0x440] sm:$0xff] }
  0x45   :  { %3067 = vmatprep.subr.bf16.mxu1 %v3200_v20  ;;  %1378 = vmatpush1.bf16.msra.mxu0 %v3195_v17  ;;  %v278_v17 = vpack.c.bf16 %v96_v10, %v89_v9  ;;  %v145_v9 = vld [vmem:[%s4763_s0 + $0x3f8] sm:$0xff]  ;;  %v152_v10 = vld [vmem:[%s4763_s0 + $0x430] sm:$0xff] }
  0x46   :  { %1379 = vmatprep.subr.bf16.mxu0 %v3200_v20  ;;  %v88_v20 = vld [vmem:[%s4763_s0 + $0x230] sm:$0xff] }
  0x48   :  { %3083 = vmatpush1.bf16.msra.mxu1 %v3198_v25 }
  0x49   :  { %3068 = vmatprep.subr.bf16.mxu1 %v3203_v30  ;;  %1380 = vmatpush1.bf16.msra.mxu0 %v3198_v25  ;;  %v103_v25 = vld [vmem:[%s4763_s0 + $0x2a8] sm:$0xff] }
  0x4a   :  { %1034 = vmatmul.mubr.bf16.gmra.mxu0 %v249_v31  ;;  %1381 = vmatprep.subr.bf16.mxu0 %v3203_v30  ;;  %v3227_v30 = vld [vmem:[%s4762_s1 + $0x2d4] ss:$8 sps:$4 sm:$0xff]   ;;  %v277_v31 = vpack.c.bf16 %v95_v21, %v88_v20  ;;  %v151_v20 = vld [vmem:[%s4763_s0 + $0x428] sm:$0xff]  ;;  %v146_v21 = vld [vmem:[%s4763_s0 + $0x400] sm:$0xff] }
  0x4b   :  { %1227 = vmatmul.mubr.bf16.gmra.mxu1 %v251_v32  ;;  %1043 = vmatprep.mubr.bf16.mxu0 %v257_v33  ;;  %v279_v32 = vpack.c.bf16 %v97_v24, %v90_v23  ;;  %v285_v33 = vpack.c.bf16 %v110_v26, %v103_v25  ;;  %v159_v23 = vld [vmem:[%s4763_s0 + $0x468] sm:$0xff]  ;;  %v166_v24 = vld [vmem:[%s4763_s0 + $0x4a0] sm:$0xff]  ;;  %v161_v25 = vld [vmem:[%s4763_s0 + $0x478] sm:$0xff] }
  0x4c   :  { %1236 = vmatprep.mubr.bf16.mxu1 %v259_v34  ;;  %3084 = vmatpush1.bf16.msra.mxu1 %v3201_v35  ;;  %v287_v34 = vpack.c.bf16 %v112_v28, %v105_v27  ;;  %v168_v26 = vld [vmem:[%s4763_s0 + $0x4b0] sm:$0xff] }
  0x4d   :  { %3069 = vmatprep.subr.bf16.mxu1 %v3206_v38  ;;  %1382 = vmatpush1.bf16.msra.mxu0 %v3201_v35  ;;  %v3225_v35 = vld [vmem:[%s4762_s1 + $0x2d0] ss:$8 sps:$4 sm:$0xff]  }
  0x4e   :  { %1383 = vmatprep.subr.bf16.mxu0 %v3206_v38  ;;  %v3230_v38 = vld [vmem:[%s4762_s1 + $0x2c4] ss:$8 sps:$4 sm:$0xff]  }
  0x50   :  { %3085 = vmatpush1.bf16.msra.mxu1 %v3204_v45 }
  0x51   :  { %3070 = vmatprep.subr.bf16.mxu1 %v3209_v46  ;;  %1384 = vmatpush1.bf16.msra.mxu0 %v3204_v45  ;;  %v3228_v45 = vld [vmem:[%s4762_s1 + $0x2c0] ss:$8 sps:$4 sm:$0xff]  }
  0x52   :  { %1044 = vmatmul.mubr.bf16.gmra.mxu0 %v256_v47  ;;  %1385 = vmatprep.subr.bf16.mxu0 %v3209_v46  ;;  %v3233_v46 = vld [vmem:[%s4762_s1 + $0x2b4] ss:$8 sps:$4 sm:$0xff]   ;;  %v284_v47 = vpack.c.bf16 %v109_v37, %v102_v36  ;;  %v175_v37 = vld [vmem:[%s4763_s0 + $0x4e8] sm:$0xff] }
  0x53   :  { %1237 = vmatmul.mubr.bf16.gmra.mxu1 %v258_v48  ;;  %1053 = vmatprep.mubr.bf16.mxu0 %v264_v49  ;;  %v286_v48 = vpack.c.bf16 %v111_v40, %v104_v39  ;;  %v292_v49 = vpack.c.bf16 %v124_v42, %v117_v41  ;;  %v180_v36 = vld [vmem:[%s4763_s0 + $0x510] sm:$0xff] }
  0x54   :  { %1246 = vmatprep.mubr.bf16.mxu1 %v266_v50  ;;  %3086 = vmatpush1.bf16.msra.mxu1 %v3207_v51  ;;  %v294_v50 = vpack.c.bf16 %v126_v44, %v119_v43  ;;  %v172_v43 = vld [vmem:[%s4763_s0 + $0x4d0] sm:$0xff]  ;;  %v179_v44 = vld [vmem:[%s4763_s0 + $0x508] sm:$0xff] }
  0x55   :  { %3071 = vmatprep.subr.bf16.mxu1 %v3212_v54  ;;  %1386 = vmatpush1.bf16.msra.mxu0 %v3207_v51  ;;  %v3231_v51 = vld [vmem:[%s4762_s1 + $0x2b0] ss:$8 sps:$4 sm:$0xff]  }
  0x56   :  { %1387 = vmatprep.subr.bf16.mxu0 %v3212_v54  ;;  %v123_v54 = vld [vmem:[%s4763_s0 + $0x348] sm:$0xff] }
  0x58   :  { %3087 = vmatpush1.bf16.msra.mxu1 %v3210_v61 }
  0x59   :  { %3072 = vmatprep.subr.bf16.mxu1 %v3215_v62  ;;  %1388 = vmatpush1.bf16.msra.mxu0 %v3210_v61  ;;  %v3234_v61 = vld [vmem:[%s4762_s1 + $0x2a0] ss:$8 sps:$4 sm:$0xff]  }
  0x5a   :  { %1054 = vmatmul.mubr.bf16.gmra.mxu0 %v263_v63  ;;  %1389 = vmatprep.subr.bf16.mxu0 %v3215_v62  ;;  %v3239_v62 = vld [vmem:[%s4762_s1 + $0x294] ss:$8 sps:$4 sm:$0xff]   ;;  %v291_v63 = vpack.c.bf16 %v123_v54, %v116_v53 }
  0x5b   :  { %1247 = vmatmul.mubr.bf16.gmra.mxu1 %v265_v0  ;;  %1063 = vmatprep.mubr.bf16.mxu0 %v271_v1  ;;  %v293_v0 = vpack.c.bf16 %v125_v56, %v118_v55  ;;  %v299_v1 = vpack.c.bf16 %v138_v58, %v131_v57  ;;  %v186_v55 = vld [vmem:[%s4763_s0 + $0x540] sm:$0xff]  ;;  %v193_v56 = vld [vmem:[%s4763_s0 + $0x578] sm:$0xff]  ;;  %v188_v57 = vld [vmem:[%s4763_s0 + $0x550] sm:$0xff] }
  0x5c   :  { %1256 = vmatprep.mubr.bf16.mxu1 %v273_v2  ;;  %3088 = vmatpush1.bf16.msra.mxu1 %v3213_v3  ;;  %v301_v2 = vpack.c.bf16 %v140_v60, %v133_v59  ;;  %v195_v58 = vld [vmem:[%s4763_s0 + $0x588] sm:$0xff]  ;;  %v201_v59 = vld [vmem:[%s4763_s0 + $0x5b8] sm:$0xff]  ;;  %v208_v60 = vld [vmem:[%s4763_s0 + $0x5f0] sm:$0xff] }
  0x5d   :  { %3073 = vmatprep.subr.bf16.mxu1 %v3218_v6  ;;  %1390 = vmatpush1.bf16.msra.mxu0 %v3213_v3  ;;  %v3237_v3 = vld [vmem:[%s4762_s1 + $0x290] ss:$8 sps:$4 sm:$0xff]  }
  0x5e   :  { %1391 = vmatprep.subr.bf16.mxu0 %v3218_v6  ;;  %v137_v6 = vld [vmem:[%s4763_s0 + $0x3b8] sm:$0xff] }
  0x60   :  { %3089 = vmatpush1.bf16.msra.mxu1 %v3216_v13 }
  0x61   :  { %3074 = vmatprep.subr.bf16.mxu1 %v3221_v14  ;;  %1392 = vmatpush1.bf16.msra.mxu0 %v3216_v13  ;;  %v3240_v13 = vld [vmem:[%s4762_s1 + $0x280] ss:$8 sps:$4 sm:$0xff]  }
  0x62   :  { %1064 = vmatmul.mubr.bf16.gmra.mxu0 %v270_v15  ;;  %1393 = vmatprep.subr.bf16.mxu0 %v3221_v14  ;;  %v3245_v14 = vld [vmem:[%s4762_s1 + $0x304] ss:$8 sps:$4 sm:$0xff]   ;;  %v298_v15 = vpack.c.bf16 %v137_v6, %v130_v5  ;;  %v209_v6 = vld [vmem:[%s4763_s0 + $0x5f8] sm:$0xff] }
  0x63   :  { %1257 = vmatmul.mubr.bf16.gmra.mxu1 %v272_v16  ;;  %1073 = vmatprep.mubr.bf16.mxu0 %v278_v17  ;;  %v300_v16 = vpack.c.bf16 %v139_v8, %v132_v7  ;;  %v306_v17 = vpack.c.bf16 %v152_v10, %v145_v9  ;;  %v202_v5 = vld [vmem:[%s4763_s0 + $0x5c0] sm:$0xff]  ;;  %v215_v7 = vld [vmem:[%s4763_s0 + $0x628] sm:$0xff]  ;;  %v217_v9 = vld [vmem:[%s4763_s0 + $0x638] sm:$0xff] }
  0x64   :  { %1266 = vmatprep.mubr.bf16.mxu1 %v280_v18  ;;  %3090 = vmatpush2.bf16.msra.mxu1 %v3219_v19  ;;  %v308_v18 = vpack.c.bf16 %v154_v12, %v147_v11  ;;  %v222_v8 = vld [vmem:[%s4763_s0 + $0x660] sm:$0xff]  ;;  %v224_v10 = vld [vmem:[%s4763_s0 + $0x670] sm:$0xff]  ;;  %v335_v12 = vpack.c.bf16 %v209_v6, %v202_v5  ;;  %v233_v6 = vld [vmem:[%s4763_s0 + $0x6b8] sm:$0xff] }
  0x65   :  { %3075 = vmatprep.subr.bf16.mxu1 %v3224_v22  ;;  %1394 = vmatpush2.bf16.msra.mxu0 %v3219_v19  ;;  %v144_v19 = vld [vmem:[%s4763_s0 + $0x3f0] sm:$0xff] }
  0x66   :  { %1395 = vmatprep.subr.bf16.mxu0 %v3224_v22  ;;  %v153_v22 = vld [vmem:[%s4763_s0 + $0x438] sm:$0xff]  ;;  %v305_v27 = vpack.c.bf16 %v151_v20, %v144_v19  ;;  %v236_v20 = vld [vmem:[%s4763_s0 + $0x6d0] sm:$0xff] }
  0x67   :  { %v307_v28 = vpack.c.bf16 %v153_v22, %v146_v21  ;;  %v229_v19 = vld [vmem:[%s4763_s0 + $0x698] sm:$0xff]  ;;  %v231_v21 = vld [vmem:[%s4763_s0 + $0x6a8] sm:$0xff]  ;;  %v238_v22 = vld [vmem:[%s4763_s0 + $0x6e0] sm:$0xff] }
  0x68   :  { %3091 = vmatpush2.bf16.msra.mxu1 %v3222_v29  ;;  %v72_v5 = vld [vmem:[%s4763_s0 + $0x1b0] sm:$0xff] }
  0x69   :  { %3076 = vmatprep.subr.bf16.mxu1 %v3227_v30  ;;  %1396 = vmatpush2.bf16.msra.mxu0 %v3222_v29  ;;  %v313_v29 = vpack.c.bf16 %v166_v24, %v159_v23 }
  0x6a   :  { %1074 = vmatmul.mubr.bf16.gmra.mxu0 %v277_v31  ;;  %1397 = vmatprep.subr.bf16.mxu0 %v3227_v30  ;;  %v315_v30 = vpack.c.bf16 %v168_v26, %v161_v25  ;;  %v158_v31 = vld [vmem:[%s4763_s0 + $0x460] sm:$0xff]  ;;  %v348_v25 = vpack.c.bf16 %v236_v20, %v229_v19  ;;  %v350_v26 = vpack.c.bf16 %v238_v22, %v231_v21  ;;  %v3247_v19 = vld [vmem:[%s4764_s2 + $0x38] sm:$0xff]  }
  0x6b   :  { %1267 = vmatmul.mubr.bf16.gmra.mxu1 %v279_v32  ;;  %1083 = vmatprep.mubr.bf16.mxu0 %v285_v33  ;;  %v165_v32 = vld [vmem:[%s4763_s0 + $0x498] sm:$0xff]  ;;  %v160_v33 = vld [vmem:[%s4763_s0 + $0x470] sm:$0xff] }
  0x6c   :  { %1276 = vmatprep.mubr.bf16.mxu1 %v287_v34  ;;  %3092 = vmatpush2.bf16.msra.mxu1 %v3225_v35  ;;  %v167_v34 = vld [vmem:[%s4763_s0 + $0x4a8] sm:$0xff]  ;;  %v312_v39 = vpack.c.bf16 %v165_v32, %v158_v31  ;;  %v30_v32 = vld [vmem:[%s4763_s0 + $0x60] sm:$0xff] }
  0x6d   :  { %3077 = vmatprep.subr.bf16.mxu1 %v3230_v38  ;;  %1398 = vmatpush2.bf16.msra.mxu0 %v3225_v35  ;;  %v173_v35 = vld [vmem:[%s4763_s0 + $0x4d8] sm:$0xff]  ;;  %v314_v40 = vpack.c.bf16 %v167_v34, %v160_v33  ;;  %v23_v31 = vld [vmem:[%s4763_s0 + $0x28] sm:$0xff]  ;;  %v198_v34 = vld [vmem:[%s4763_s0 + $0x5a0] sm:$0xff] }
  0x6e   :  { %1399 = vmatprep.subr.bf16.mxu0 %v3230_v38  ;;  %v182_v38 = vld [vmem:[%s4763_s0 + $0x520] sm:$0xff]  ;;  %v320_v41 = vpack.c.bf16 %v180_v36, %v173_v35  ;;  %v191_v33 = vld [vmem:[%s4763_s0 + $0x568] sm:$0xff] }
  0x6f   :  { %v322_v42 = vpack.c.bf16 %v182_v38, %v175_v37  ;;  %v247_v37 = vpack.c.bf16 %v30_v32, %v23_v31  ;;  %v331_v38 = vpack.c.bf16 %v198_v34, %v191_v33  ;;  %v3249_v31 = vld [vmem:[%s4764_s2 + $0x30] sm:$0xff]  }
  0x70   :  { %3093 = vmatpush2.bf16.msra.mxu1 %v3228_v45 }
  0x71   :  { %3078 = vmatprep.subr.bf16.mxu1 %v3233_v46  ;;  %1400 = vmatpush2.bf16.msra.mxu0 %v3228_v45  ;;  %v174_v45 = vld [vmem:[%s4763_s0 + $0x4e0] sm:$0xff] }
  0x72   :  { %1084 = vmatmul.mubr.bf16.gmra.mxu0 %v284_v47  ;;  %1401 = vmatprep.subr.bf16.mxu0 %v3233_v46  ;;  %v181_v46 = vld [vmem:[%s4763_s0 + $0x518] sm:$0xff]  ;;  %v187_v47 = vld [vmem:[%s4763_s0 + $0x548] sm:$0xff] }
  0x73   :  { %1277 = vmatmul.mubr.bf16.gmra.mxu1 %v286_v48  ;;  %1093 = vmatprep.mubr.bf16.mxu0 %v292_v49  ;;  %v194_v48 = vld [vmem:[%s4763_s0 + $0x580] sm:$0xff]  ;;  %v189_v49 = vld [vmem:[%s4763_s0 + $0x558] sm:$0xff] }
  0x74   :  { %1286 = vmatprep.mubr.bf16.mxu1 %v294_v50  ;;  %3094 = vmatpush2.bf16.msra.mxu1 %v3231_v51  ;;  %v196_v50 = vld [vmem:[%s4763_s0 + $0x590] sm:$0xff]  ;;  %v327_v53 = vpack.c.bf16 %v194_v48, %v187_v47 }
  0x75   :  { %3079 = vmatprep.subr.bf16.mxu1 %v3236_v52  ;;  %1402 = vmatpush2.bf16.msra.mxu0 %v3231_v51  ;;  %v319_v51 = vpack.c.bf16 %v179_v44, %v172_v43  ;;  %v329_v54 = vpack.c.bf16 %v196_v50, %v189_v49  ;;  %v37_v43 = vld [vmem:[%s4763_s0 + $0x98] sm:$0xff]  ;;  %v44_v44 = vld [vmem:[%s4763_s0 + $0xd0] sm:$0xff]  ;;  %v3243_v49 = vld [vmem:[%s4762_s1 + $0x300] ss:$8 sps:$4 sm:$0xff]  }
  0x76   :  { %1403 = vmatprep.subr.bf16.mxu0 %v3236_v52  ;;  %v321_v52 = vpack.c.bf16 %v181_v46, %v174_v45  ;;  %v205_v45 = vld [vmem:[%s4763_s0 + $0x5d8] sm:$0xff]  ;;  %v212_v46 = vld [vmem:[%s4763_s0 + $0x610] sm:$0xff]  ;;  %v254_v50 = vpack.c.bf16 %v44_v44, %v37_v43  ;;  %v3250_v44 = vld [vmem:[%s4764_s2 + $0x68] sm:$0xff]  }
  0x78   :  { %3095 = vmatpush2.bf16.msra.mxu1 %v3234_v61 }
  0x79   :  { %3080 = vmatprep.subr.bf16.mxu1 %v3239_v62  ;;  %1404 = vmatpush2.bf16.msra.mxu0 %v3234_v61  ;;  %v203_v61 = vld [vmem:[%s4763_s0 + $0x5c8] sm:$0xff] }
  0x7a   :  { %1094 = vmatmul.mubr.bf16.gmra.mxu0 %v291_v63  ;;  %1405 = vmatprep.subr.bf16.mxu0 %v3239_v62  ;;  %v210_v62 = vld [vmem:[%s4763_s0 + $0x600] sm:$0xff]  ;;  %v326_v63 = vpack.c.bf16 %v193_v56, %v186_v55  ;;  %v211_v55 = vld [vmem:[%s4763_s0 + $0x608] sm:$0xff] }
  0x7b   :  { %1287 = vmatmul.mubr.bf16.gmra.mxu1 %v293_v0  ;;  %1103 = vmatprep.mubr.bf16.mxu0 %v299_v1  ;;  %v328_v0 = vpack.c.bf16 %v195_v58, %v188_v57  ;;  %v334_v1 = vpack.c.bf16 %v208_v60, %v201_v59  ;;  %v51_v56 = vld [vmem:[%s4763_s0 + $0x108] sm:$0xff]  ;;  %v58_v57 = vld [vmem:[%s4763_s0 + $0x140] sm:$0xff] }
  0x7c   :  { %1296 = vmatprep.mubr.bf16.mxu1 %v301_v2  ;;  %3096 = vmatpush2.bf16.msra.mxu1 %v3237_v3  ;;  %v336_v2 = vpack.c.bf16 %v210_v62, %v203_v61  ;;  %v219_v58 = vld [vmem:[%s4763_s0 + $0x648] sm:$0xff]  ;;  %v226_v59 = vld [vmem:[%s4763_s0 + $0x680] sm:$0xff]  ;;  %v261_v62 = vpack.c.bf16 %v58_v57, %v51_v56 }
  0x7d   :  { %3081 = vmatprep.subr.bf16.mxu1 %v3242_v4  ;;  %1406 = vmatpush2.bf16.msra.mxu0 %v3237_v3  ;;  %v200_v3 = vld [vmem:[%s4763_s0 + $0x5b0] sm:$0xff]  ;;  %v127_v56 = vld [vmem:[%s4763_s0 + $0x368] sm:$0xff]  ;;  %v66_v57 = vld [vmem:[%s4763_s0 + $0x180] sm:$0xff] }
  0x7e   :  { %1407 = vmatprep.subr.bf16.mxu0 %v3242_v4  ;;  %v207_v4 = vld [vmem:[%s4763_s0 + $0x5e8] sm:$0xff] }
  0x7f   :  { %v333_v11 = vpack.c.bf16 %v207_v4, %v200_v3  ;;  %v225_v3 = vld [vmem:[%s4763_s0 + $0x678] sm:$0xff] }
  0x80   :  { %3097 = vmatpush2.bf16.msra.mxu1 %v3240_v13  ;;  %v65_v4 = vld [vmem:[%s4763_s0 + $0x178] sm:$0xff] }
  0x81   :  { %1408 = vmatpush2.bf16.msra.mxu0 %v3240_v13  ;;  %1584 = vmatprep.subr.bf16.mxu1 %v3245_v14  ;;  %v341_v13 = vpack.c.bf16 %v222_v8, %v215_v7  ;;  %v343_v14 = vpack.c.bf16 %v224_v10, %v217_v9  ;;  %v240_v7 = vld [vmem:[%s4763_s0 + $0x6f0] sm:$0xff]  ;;  %v268_v10 = vpack.c.bf16 %v72_v5, %v65_v4  ;;  %v87_v5 = vld [vmem:[%s4763_s0 + $0x228] sm:$0xff] }
  0x82   :  { %1104 = vmatmul.mubr.bf16.gmra.mxu0 %v298_v15  ;;  %v214_v15 = vld [vmem:[%s4763_s0 + $0x620] sm:$0xff]  ;;  %v80_v4 = vld [vmem:[%s4763_s0 + $0x1f0] sm:$0xff] }
  0x83   :  { %1297 = vmatmul.mubr.bf16.gmra.mxu1 %v300_v16  ;;  %1113 = vmatprep.mubr.bf16.mxu0 %v306_v17  ;;  %v221_v16 = vld [vmem:[%s4763_s0 + $0x658] sm:$0xff]  ;;  %v216_v17 = vld [vmem:[%s4763_s0 + $0x630] sm:$0xff] }
  0x84   :  { %1306 = vmatprep.mubr.bf16.mxu1 %v308_v18  ;;  %v223_v18 = vld [vmem:[%s4763_s0 + $0x668] sm:$0xff]  ;;  %v340_v23 = vpack.c.bf16 %v221_v16, %v214_v15 }
  0x85   :  { %v342_v24 = vpack.c.bf16 %v223_v18, %v216_v17  ;;  %v239_v15 = vld [vmem:[%s4763_s0 + $0x6e8] sm:$0xff]  ;;  %v86_v17 = vld [vmem:[%s4763_s0 + $0x220] sm:$0xff]  ;;  %v3246_v18 = vld [vmem:[%s4764_s2 + $0x78] sm:$0xff]  }
  0x86   :  { %v79_v16 = vld [vmem:[%s4763_s0 + $0x1e8] sm:$0xff]  ;;  %2882 = vmatprep.subr.bf16.mxu0 %v3246_v18  ;;  %v94_v18 = vld [vmem:[%s4763_s0 + $0x260] sm:$0xff] }
  0x87   :  { %v275_v22 = vpack.c.bf16 %v86_v17, %v79_v16  ;;  %v155_v17 = vld [vmem:[%s4763_s0 + $0x448] sm:$0xff] }
  0x8a   :  { %1114 = vmatmul.mubr.bf16.gmra.mxu0 %v305_v27  ;;  %v228_v27 = vld [vmem:[%s4763_s0 + $0x690] sm:$0xff] }
  0x8b   :  { %1307 = vmatmul.mubr.bf16.gmra.mxu1 %v307_v28  ;;  %1123 = vmatprep.mubr.bf16.mxu0 %v313_v29  ;;  %v235_v28 = vld [vmem:[%s4763_s0 + $0x6c8] sm:$0xff]  ;;  %v230_v29 = vld [vmem:[%s4763_s0 + $0x6a0] sm:$0xff] }
  0x8c   :  { %1316 = vmatprep.mubr.bf16.mxu1 %v315_v30  ;;  %v237_v30 = vld [vmem:[%s4763_s0 + $0x6d8] sm:$0xff]  ;;  %v347_v35 = vpack.c.bf16 %v235_v28, %v228_v27  ;;  %v100_v28 = vld [vmem:[%s4763_s0 + $0x290] sm:$0xff] }
  0x8d   :  { %v349_v36 = vpack.c.bf16 %v237_v30, %v230_v29  ;;  %v93_v27 = vld [vmem:[%s4763_s0 + $0x258] sm:$0xff]  ;;  %v3270_v29 = vmov 0   ;;  %v3248_v30 = vld [vmem:[%s4764_s2 + $0x70] sm:$0xff]  }
  0x8e   :  { %v282_v34 = vpack.c.bf16 %v100_v28, %v93_v27 }
  0x92   :  { %1124 = vmatmul.mubr.bf16.gmra.mxu0 %v312_v39  ;;  %v22_v39 = vld [vmem:[%s4763_s0 + $0x20] sm:$0xff] }
  0x93   :  { %1317 = vmatmul.mubr.bf16.gmra.mxu1 %v314_v40  ;;  %1133 = vmatprep.mubr.bf16.mxu0 %v320_v41  ;;  %v29_v40 = vld [vmem:[%s4763_s0 + $0x58] sm:$0xff]  ;;  %v190_v41 = vld [vmem:[%s4763_s0 + $0x560] sm:$0xff] }
  0x94   :  { %1326 = vmatprep.mubr.bf16.mxu1 %v322_v42  ;;  %v197_v42 = vld [vmem:[%s4763_s0 + $0x598] sm:$0xff]  ;;  %v246_v47 = vpack.c.bf16 %v29_v40, %v22_v39  ;;  %v107_v39 = vld [vmem:[%s4763_s0 + $0x2c8] sm:$0xff]  ;;  %v114_v40 = vld [vmem:[%s4763_s0 + $0x300] sm:$0xff] }
  0x95   :  { %v330_v48 = vpack.c.bf16 %v197_v42, %v190_v41  ;;  %v289_v43 = vpack.c.bf16 %v114_v40, %v107_v39  ;;  %v108_v39 = vld [vmem:[%s4763_s0 + $0x2d0] sm:$0xff]  ;;  %v115_v40 = vld [vmem:[%s4763_s0 + $0x308] sm:$0xff] }
  0x9a   :  { %1134 = vmatmul.mubr.bf16.gmra.mxu0 %v319_v51  ;;  %v338_v51 = vpack.c.bf16 %v212_v46, %v205_v45  ;;  %v3251_v45 = vld [vmem:[%s4764_s2 + $0x28] sm:$0xff]   ;;  %v106_v46 = vld [vmem:[%s4763_s0 + $0x2c0] sm:$0xff] }
  0x9b   :  { %1327 = vmatmul.mubr.bf16.gmra.mxu1 %v321_v52  ;;  %1143 = vmatprep.mubr.bf16.mxu0 %v327_v53  ;;  %v36_v52 = vld [vmem:[%s4763_s0 + $0x90] sm:$0xff]  ;;  %v43_v53 = vld [vmem:[%s4763_s0 + $0xc8] sm:$0xff] }
  0x9c   :  { %1336 = vmatprep.mubr.bf16.mxu1 %v329_v54  ;;  %v204_v54 = vld [vmem:[%s4763_s0 + $0x5d0] sm:$0xff]  ;;  %v253_v60 = vpack.c.bf16 %v43_v53, %v36_v52 }
  0x9d   :  { %v337_v61 = vpack.c.bf16 %v211_v55, %v204_v54  ;;  %v120_v55 = vld [vmem:[%s4763_s0 + $0x330] sm:$0xff] }
  0xa2   :  { %1144 = vmatmul.mubr.bf16.gmra.mxu0 %v326_v63  ;;  %v345_v63 = vpack.c.bf16 %v226_v59, %v219_v58  ;;  %v73_v58 = vld [vmem:[%s4763_s0 + $0x1b8] sm:$0xff]  ;;  %v135_v59 = vld [vmem:[%s4763_s0 + $0x3a8] sm:$0xff] }
  0xa3   :  { %1337 = vmatmul.mubr.bf16.gmra.mxu1 %v328_v0  ;;  %1153 = vmatprep.mubr.bf16.mxu0 %v334_v1  ;;  %v50_v0 = vld [vmem:[%s4763_s0 + $0x100] sm:$0xff]  ;;  %v57_v1 = vld [vmem:[%s4763_s0 + $0x138] sm:$0xff] }
  0xa4   :  { %1346 = vmatprep.mubr.bf16.mxu1 %v336_v2  ;;  %v218_v2 = vld [vmem:[%s4763_s0 + $0x640] sm:$0xff]  ;;  %v260_v8 = vpack.c.bf16 %v57_v1, %v50_v0  ;;  %v269_v0 = vpack.c.bf16 %v73_v58, %v66_v57  ;;  %v176_v58 = vld [vmem:[%s4763_s0 + $0x4f0] sm:$0xff] }
  0xa5   :  { %v344_v9 = vpack.c.bf16 %v225_v3, %v218_v2  ;;  %v134_v2 = vld [vmem:[%s4763_s0 + $0x3a0] sm:$0xff]  ;;  %v141_v3 = vld [vmem:[%s4763_s0 + $0x3d8] sm:$0xff] }
  0xaa   :  { %1154 = vmatmul.mubr.bf16.gmra.mxu0 %v333_v11  ;;  %v352_v11 = vpack.c.bf16 %v240_v7, %v233_v6  ;;  %v149_v6 = vld [vmem:[%s4763_s0 + $0x418] sm:$0xff]  ;;  %v156_v7 = vld [vmem:[%s4763_s0 + $0x450] sm:$0xff] }
  0xab   :  { %1347 = vmatmul.mubr.bf16.gmra.mxu1 %v335_v12  ;;  %1163 = vmatprep.mubr.bf16.mxu0 %v341_v13  ;;  %v64_v12 = vld [vmem:[%s4763_s0 + $0x170] sm:$0xff]  ;;  %v71_v13 = vld [vmem:[%s4763_s0 + $0x1a8] sm:$0xff] }
  0xac   :  { %1356 = vmatprep.mubr.bf16.mxu1 %v343_v14  ;;  %v232_v14 = vld [vmem:[%s4763_s0 + $0x6b0] sm:$0xff]  ;;  %v267_v20 = vpack.c.bf16 %v71_v13, %v64_v12  ;;  %v3255_v12 = vld [vmem:[%s4764_s2 + $0x18] sm:$0xff]  }
  0xad   :  { %v351_v21 = vpack.c.bf16 %v239_v15, %v232_v14  ;;  %v148_v15 = vld [vmem:[%s4763_s0 + $0x410] sm:$0xff] }
  0xae   :  { %v309_v27 = vpack.c.bf16 %v155_v17, %v148_v15  ;;  %v143_v15 = vld [vmem:[%s4763_s0 + $0x3e8] sm:$0xff] }
  0xb2   :  { %1164 = vmatmul.mubr.bf16.gmra.mxu0 %v340_v23  ;;  %v78_v23 = vld [vmem:[%s4763_s0 + $0x1e0] sm:$0xff] }
  0xb3   :  { %1357 = vmatmul.mubr.bf16.gmra.mxu1 %v342_v24  ;;  %1173 = vmatprep.mubr.bf16.mxu0 %v348_v25  ;;  %v85_v24 = vld [vmem:[%s4763_s0 + $0x218] sm:$0xff]  ;;  %v24_v25 = vld [vmem:[%s4763_s0 + $0x30] sm:$0xff] }
  0xb4   :  { %1366 = vmatprep.mubr.bf16.mxu1 %v350_v26  ;;  %v31_v26 = vld [vmem:[%s4763_s0 + $0x68] sm:$0xff]  ;;  %v274_v32 = vpack.c.bf16 %v85_v24, %v78_v23  ;;  %v170_v23 = vld [vmem:[%s4763_s0 + $0x4c0] sm:$0xff] }
  0xb5   :  { %v248_v33 = vpack.c.bf16 %v31_v26, %v24_v25 }
  0xba   :  { %1174 = vmatmul.mubr.bf16.gmra.mxu0 %v347_v35  ;;  %v92_v35 = vld [vmem:[%s4763_s0 + $0x250] sm:$0xff] }
  0xbb   :  { %1367 = vmatmul.mubr.bf16.gmra.mxu1 %v349_v36  ;;  %1409 = vmatprep.mubr.bf16.mxu0 %v247_v37  ;;  %v99_v36 = vld [vmem:[%s4763_s0 + $0x288] sm:$0xff]  ;;  %v38_v37 = vld [vmem:[%s4763_s0 + $0xa0] sm:$0xff] }
  0xbc   :  { %1529 = vmatprep.mubr.bf16.mxu1 %v331_v38  ;;  %v45_v38 = vld [vmem:[%s4763_s0 + $0xd8] sm:$0xff]  ;;  %v281_v41 = vpack.c.bf16 %v99_v36, %v92_v35  ;;  %v162_v36 = vld [vmem:[%s4763_s0 + $0x480] sm:$0xff] }
  0xbd   :  { %v255_v42 = vpack.c.bf16 %v45_v38, %v38_v37  ;;  %v169_v38 = vld [vmem:[%s4763_s0 + $0x4b8] sm:$0xff] }
  0xc2   :  { %1410 = vmatmul.mubr.bf16.vlgmr.msra.gmra.mxu0 %v246_v47  ;;  %v113_v47 = vld [vmem:[%s4763_s0 + $0x2f8] sm:$0xff] }
  0xc3   :  { %1530 = vmatmul.mubr.bf16.vlgmr.msra.gmra.mxu1 %v330_v48  ;;  %1419 = vmatprep.mubr.bf16.mxu0 %v254_v50  ;;  %v52_v48 = vld [vmem:[%s4763_s0 + $0x110] sm:$0xff]  ;;  %v121_v50 = vld [vmem:[%s4763_s0 + $0x338] sm:$0xff]  ;;  %v288_v52 = vpack.c.bf16 %v113_v47, %v106_v46 }
  0xc4   :  { %1585 = vmatpush1.bf16.msra.mxu1 %v3243_v49  ;;  %1539 = vmatprep.mubr.bf16.mxu1 %v338_v51  ;;  %v59_v49 = vld [vmem:[%s4763_s0 + $0x148] sm:$0xff]  ;;  %v128_v51 = vld [vmem:[%s4763_s0 + $0x370] sm:$0xff] }
  0xc5   :  { %2883 = vmatpush3.bf16.msra.mxu0 %v3247_v19  ;;  %v262_v53 = vpack.c.bf16 %v59_v49, %v52_v48  ;;  %v296_v54 = vpack.c.bf16 %v128_v51, %v121_v50  ;;  %v101_v19 = vld [vmem:[%s4763_s0 + $0x298] sm:$0xff]  ;;  %v3256_v46 = vld [vmem:[%s4764_s2 + $0x50] sm:$0xff]   ;;  %v316_v50 = vpack.c.bf16 %v169_v38, %v162_v36  ;;  %v290_v51 = vpack.c.bf16 %v115_v40, %v108_v39 }
  0xc6   :  { %2884 = vmatprep.subr.bf16.mxu0 %v3248_v30  ;;  %v283_v28 = vpack.c.bf16 %v101_v19, %v94_v18  ;;  %v3257_v47 = vld [vmem:[%s4764_s2 + $0x10] sm:$0xff]  }
  0xc9   :  { %2885 = vmatpush3.bf16.msra.mxu0 %v3249_v31 }
  0xca   :  { %1420 = vmatmul.mubr.bf16.gmra.mxu0 %v253_v60  ;;  %2886 = vmatprep.subr.bf16.mxu0 %v3250_v44  ;;  %v142_v60 = vld [vmem:[%s4763_s0 + $0x3e0] sm:$0xff]  ;;  %v184_v44 = vld [vmem:[%s4763_s0 + $0x530] sm:$0xff] }
  0xcb   :  { %1540 = vmatmul.mubr.bf16.gmra.mxu1 %v337_v61  ;;  %1429 = vmatprep.mubr.bf16.mxu0 %v261_v62  ;;  %v3252_v61 = vld [vmem:[%s4764_s2 + $0x60] sm:$0xff]   ;;  %v303_v1 = vpack.c.bf16 %v142_v60, %v135_v59  ;;  %v183_v60 = vld [vmem:[%s4763_s0 + $0x528] sm:$0xff] }
  0xcc   :  { %1549 = vmatprep.mubr.bf16.mxu1 %v345_v63  ;;  %v3253_v62 = vld [vmem:[%s4764_s2 + $0x20] sm:$0xff]   ;;  %v295_v63 = vpack.c.bf16 %v127_v56, %v120_v55 }
  0xcd   :  { %2887 = vmatpush3.bf16.msra.mxu0 %v3251_v45 }
  0xce   :  { %2888 = vmatprep.subr.bf16.mxu0 %v3252_v61  ;;  %v122_v61 = vld [vmem:[%s4763_s0 + $0x340] sm:$0xff] }
  0xd1   :  { %2889 = vmatpush3.bf16.msra.mxu0 %v3253_v62  ;;  %v129_v62 = vld [vmem:[%s4763_s0 + $0x378] sm:$0xff] }
  0xd2   :  { %1430 = vmatmul.mubr.bf16.gmra.mxu0 %v260_v8  ;;  %v302_v8 = vpack.c.bf16 %v141_v3, %v134_v2 }
  0xd3   :  { %1550 = vmatmul.mubr.bf16.gmra.mxu1 %v344_v9  ;;  %1439 = vmatprep.mubr.bf16.mxu0 %v268_v10  ;;  %v276_v9 = vpack.c.bf16 %v87_v5, %v80_v4  ;;  %v310_v10 = vpack.c.bf16 %v156_v7, %v149_v6  ;;  %v323_v4 = vpack.c.bf16 %v183_v60, %v176_v58 }
  0xd4   :  { %1559 = vmatprep.mubr.bf16.mxu1 %v352_v11  ;;  %v3254_v11 = vld [vmem:[%s4764_s2 + $0x58] sm:$0xff]   ;;  %v297_v5 = vpack.c.bf16 %v129_v62, %v122_v61 }
  0xd5   :  { %2890 = vmatprep.subr.bf16.mxu0 %v3254_v11 }
  0xd6   :  { %2891 = vmatpush3.bf16.msra.mxu0 %v3255_v12 }
  0xd7   :  { %2892 = vmatprep.subr.bf16.mxu0 %v3256_v46  ;;  %v3261_v46 = vld [vmem:[%s4764_s2] sm:$0xff]  }
  0xda   :  { %1440 = vmatmul.mubr.bf16.gmra.mxu0 %v267_v20 }
  0xdb   :  { %1560 = vmatmul.mubr.bf16.gmra.mxu1 %v351_v21  ;;  %1449 = vmatprep.mubr.bf16.mxu0 %v275_v22  ;;  %v163_v22 = vld [vmem:[%s4763_s0 + $0x488] sm:$0xff] }
  0xdc   :  { %1602 = vmatprep.mubr.bf16.mxu1 %v3270_v29  ;;  %v317_v31 = vpack.c.bf16 %v170_v23, %v163_v22  ;;  %2893 = vmatpush3.bf16.msra.mxu0 %v3257_v47 }
  0xe2   :  { %1450 = vmatmul.mubr.bf16.gmra.mxu0 %v274_v32 }
  0xe3   :  { %2683 = vmatmul.mubr.msk.bf16.vlgmr.msra.gmra.mxu1 %vm942_vm0, %v248_v33  ;;  %1459 = vmatprep.mubr.bf16.mxu0 %v282_v34 }
  0xe4   :  { %1612 = vmatprep.mubr.bf16.mxu1 %v3270_v29 }
  0xea   :  { %1460 = vmatmul.mubr.bf16.gmra.mxu0 %v281_v41 }
  0xeb   :  { %2684 = vmatmul.mubr.msk.bf16.gmra.mxu1 %vm942_vm0, %v255_v42  ;;  %1469 = vmatprep.mubr.bf16.mxu0 %v289_v43  ;;  %v177_v43 = vld [vmem:[%s4763_s0 + $0x4f8] sm:$0xff] }
  0xec   :  { %1622 = vmatprep.mubr.bf16.mxu1 %v3270_v29 }
  0xf2   :  { %1470 = vmatmul.mubr.bf16.gmra.mxu0 %v288_v52 }
  0xf3   :  { %2685 = vmatmul.mubr.msk.bf16.gmra.mxu1 %vm942_vm0, %v262_v53  ;;  %1479 = vmatprep.mubr.bf16.mxu0 %v296_v54  ;;  %v324_v53 = vpack.c.bf16 %v184_v44, %v177_v43  ;;  %v3260_v44 = vld [vmem:[%s4764_s2 + $0x40] sm:$0xff]  }
  0xf4   :  { %1632 = vmatprep.mubr.bf16.mxu1 %v3270_v29 }
  0xfa   :  { %1480 = vmatmul.mubr.bf16.gmra.mxu0 %v295_v63 }
  0xfb   :  { %2686 = vmatmul.mubr.msk.bf16.gmra.mxu1 %vm942_vm0, %v269_v0  ;;  %1489 = vmatprep.mubr.bf16.mxu0 %v303_v1 }
  0xfc   :  { %1642 = vmatprep.mubr.bf16.mxu1 %v3270_v29 }
 0x102   :  { %v1025_v13 = vpop.f32.mrf.mxu0  ;;  %1490 = vmatmul.mubr.bf16.gmra.mxu0 %v302_v8 }
 0x103   :  { %v1218_v14 = vpop.f32.mrf.mxu1  ;;  %2687 = vmatmul.mubr.msk.bf16.gmra.mxu1 %vm942_vm0, %v276_v9  ;;  %1499 = vmatprep.mubr.bf16.mxu0 %v310_v10  ;;  %v3258_v9 = vld [vmem:[%s4764_s2 + $0x48] sm:$0xff]  }
 0x104   :  { %v4209_v16 = vadd.f32 %v1218_v14, %v1025_v13  ;;  %1652 = vmatprep.mubr.bf16.mxu1 %v3270_v29  ;;  %v1027_v20 = vpop.f32.mrf.mxu0  ;;  %v3259_v10 = vld [vmem:[%s4764_s2 + $0x8] sm:$0xff]   ;;  %v136_v14 = vld [vmem:[%s4763_s0 + $0x3b0] sm:$0xff]  ;;  %2894 = vmatprep.subr.bf16.mxu0 %v3258_v9 }
 0x105   :  { %v1220_v21 = vpop.f32.mrf.mxu1  ;;  %2895 = vmatpush3.bf16.msra.mxu0 %v3259_v10  ;;  %v304_v22 = vpack.c.bf16 %v143_v15, %v136_v14  ;;  %v178_v10 = vld [vmem:[%s4763_s0 + $0x500] sm:$0xff] }
 0x106   :  { %v4227_v24 = vadd.f32 %v1220_v21, %v1027_v20  ;;  %v1029_v25 = vpop.f32.mrf.mxu0  ;;  %2896 = vmatprep.subr.bf16.mxu0 %v3260_v44 }
 0x107   :  { %v1222_v26 = vpop.f32.mrf.mxu1 }
 0x108   :  { %v4229_v30 = vadd.f32 %v1222_v26, %v1029_v25  ;;  %v4231_v32 = vpop.f32.mrf.mxu0 }
 0x109   :  { %v4233_v33 = vpop.f32.mrf.mxu1  ;;  %2897 = vmatpush3.bf16.msra.mxu0 %v3261_v46 }
 0x10a   :  { %v1035_v34 = vpop.f32.mrf.mxu0  ;;  %1500 = vmatmul.mubr.bf16.gmra.mxu0 %v309_v27 }
 0x10b   :  { %v1228_v35 = vpop.f32.mrf.mxu1  ;;  %2688 = vmatmul.mubr.msk.bf16.gmra.mxu1 %vm942_vm0, %v283_v28  ;;  %1509 = vmatprep.mubr.bf16.mxu0 %v317_v31 }
 0x10c   :  { %v4239_v37 = vadd.f32 %v1228_v35, %v1035_v34  ;;  %1662 = vmatprep.mubr.bf16.mxu1 %v3270_v29  ;;  %v1037_v41 = vpop.f32.mrf.mxu0  ;;  %v150_v34 = vld [vmem:[%s4763_s0 + $0x420] sm:$0xff]  ;;  %v157_v35 = vld [vmem:[%s4763_s0 + $0x458] sm:$0xff] }
 0x10d   :  { %v1230_v42 = vpop.f32.mrf.mxu1 }
 0x10e   :  { %v4257_v45 = vadd.f32 %v1230_v42, %v1037_v41  ;;  %v1039_v48 = vpop.f32.mrf.mxu0  ;;  %v311_v42 = vpack.c.bf16 %v157_v35, %v150_v34 }
 0x10f   :  { %v1232_v49 = vpop.f32.mrf.mxu1 }
 0x110   :  { %v4265_v52 = vadd.f32 %v1232_v49, %v1039_v48  ;;  %v4267_v54 = vpop.f32.mrf.mxu0 }
 0x111   :  { %v4269_v55 = vpop.f32.mrf.mxu1 }
 0x112   :  { %v1045_v56 = vpop.f32.mrf.mxu0  ;;  %1510 = vmatmul.mubr.bf16.gmra.mxu0 %v316_v50 }
 0x113   :  { %v1238_v57 = vpop.f32.mrf.mxu1  ;;  %2689 = vmatmul.mubr.msk.bf16.gmra.mxu1 %vm942_vm0, %v290_v51  ;;  %1519 = vmatprep.mubr.bf16.mxu0 %v324_v53  ;;  %v164_v53 = vld [vmem:[%s4763_s0 + $0x490] sm:$0xff] }
 0x114   :  { %v4275_v59 = vadd.f32 %v1238_v57, %v1045_v56  ;;  %1672 = vmatprep.mubr.bf16.mxu1 %v3270_v29  ;;  %v1047_v63 = vpop.f32.mrf.mxu0  ;;  %v171_v56 = vld [vmem:[%s4763_s0 + $0x4c8] sm:$0xff] }
 0x115   :  { %v1240_v0 = vpop.f32.mrf.mxu1 }
 0x116   :  { %v4287_v1 = vadd.f32 %v1240_v0, %v1047_v63  ;;  %v1049_v2 = vpop.f32.mrf.mxu0  ;;  %v318_v63 = vpack.c.bf16 %v171_v56, %v164_v53 }
 0x117   :  { %v1242_v3 = vpop.f32.mrf.mxu1 }
 0x118   :  { %v4289_v6 = vadd.f32 %v1242_v3, %v1049_v2  ;;  %v4291_v7 = vpop.f32.mrf.mxu0 }
 0x119   :  { %v4293_v8 = vpop.f32.mrf.mxu1 }
 0x11a   :  { %v1055_v11 = vpop.f32.mrf.mxu0  ;;  %1520 = vmatmul.mubr.bf16.gmra.mxu0 %v323_v4 }
 0x11b   :  { %v1248_v12 = vpop.f32.mrf.mxu1  ;;  %2690 = vmatmul.mubr.msk.bf16.gmra.mxu1 %vm942_vm0, %v297_v5 }
 0x11c   :  { %v4302_v13 = vadd.f32 %v1248_v12, %v1055_v11  ;;  %1682 = vmatprep.mubr.bf16.mxu1 %v3270_v29  ;;  %v1057_v17 = vpop.f32.mrf.mxu0  ;;  %v185_v11 = vld [vmem:[%s4763_s0 + $0x538] sm:$0xff] }
 0x11d   :  { %v1250_v18 = vpop.f32.mrf.mxu1 }
 0x11e   :  { %v4311_v19 = vadd.f32 %v1250_v18, %v1057_v17  ;;  %v1059_v20 = vpop.f32.mrf.mxu0 }
 0x11f   :  { %v1252_v21 = vpop.f32.mrf.mxu1 }
 0x120   :  { %v4313_v23 = vadd.f32 %v1252_v21, %v1059_v20  ;;  %v4315_v25 = vpop.f32.mrf.mxu0  ;;  %v325_v20 = vpack.c.bf16 %v185_v11, %v178_v10 }
 0x121   :  { %v4317_v26 = vpop.f32.mrf.mxu1 }
 0x122   :  { %v1065_v27 = vpop.f32.mrf.mxu0 }
 0x123   :  { %v1258_v28 = vpop.f32.mrf.mxu1  ;;  %2691 = vmatmul.mubr.msk.bf16.gmra.mxu1 %vm942_vm0, %v304_v22 }
 0x124   :  { %v4320_v31 = vadd.f32 %v1258_v28, %v1065_v27  ;;  %1692 = vmatprep.mubr.bf16.mxu1 %v3270_v29  ;;  %v1067_v36 = vpop.f32.mrf.mxu0 }
 0x125   :  { %v1260_v38 = vpop.f32.mrf.mxu1 }
 0x126   :  { %v4329_v39 = vadd.f32 %v1260_v38, %v1067_v36  ;;  %v1069_v40 = vpop.f32.mrf.mxu0  ;;  %v192_v36 = vld [vmem:[%s4763_s0 + $0x570] sm:$0xff]  ;;  %v199_v38 = vld [vmem:[%s4763_s0 + $0x5a8] sm:$0xff] }
 0x127   :  { %v1262_v41 = vpop.f32.mrf.mxu1 }
 0x128   :  { %v4331_v43 = vadd.f32 %v1262_v41, %v1069_v40  ;;  %v4339_v47 = vpop.f32.mrf.mxu0 }
 0x129   :  { %v4341_v48 = vpop.f32.mrf.mxu1 }
 0x12a   :  { %v1075_v49 = vpop.f32.mrf.mxu0 }
 0x12b   :  { %v1268_v50 = vpop.f32.mrf.mxu1  ;;  %2692 = vmatmul.mubr.msk.bf16.gmra.mxu1 %vm942_vm0, %v311_v42 }
 0x12c   :  { %v4344_v51 = vadd.f32 %v1268_v50, %v1075_v49  ;;  %1702 = vmatprep.mubr.bf16.mxu1 %v3270_v29  ;;  %v1077_v57 = vpop.f32.mrf.mxu0  ;;  %v332_v49 = vpack.c.bf16 %v199_v38, %v192_v36  ;;  %v220_v38 = vld [vmem:[%s4763_s0 + $0x650] sm:$0xff] }
 0x12d   :  { %v1270_v58 = vpop.f32.mrf.mxu1 }
 0x12e   :  { %v4353_v60 = vadd.f32 %v1270_v58, %v1077_v57  ;;  %v1079_v61 = vpop.f32.mrf.mxu0 }
 0x12f   :  { %v1272_v62 = vpop.f32.mrf.mxu1 }
 0x130   :  { %v4355_v0 = vadd.f32 %v1272_v62, %v1079_v61  ;;  %v4357_v2 = vpop.f32.mrf.mxu0  ;;  %v206_v62 = vld [vmem:[%s4763_s0 + $0x5e0] sm:$0xff] }
 0x131   :  { %v4359_v3 = vpop.f32.mrf.mxu1 }
 0x132   :  { %v1085_v4 = vpop.f32.mrf.mxu0 }
 0x133   :  { %v1278_v5 = vpop.f32.mrf.mxu1  ;;  %2693 = vmatmul.mubr.msk.bf16.gmra.mxu1 %vm942_vm0, %v318_v63  ;;  %v213_v63 = vld [vmem:[%s4763_s0 + $0x618] sm:$0xff] }
 0x134   :  { %v4362_v9 = vadd.f32 %v1278_v5, %v1085_v4  ;;  %1712 = vmatprep.mubr.bf16.mxu1 %v3270_v29  ;;  %v1087_v12 = vpop.f32.mrf.mxu0 }
 0x135   :  { %v1280_v14 = vpop.f32.mrf.mxu1 }
 0x136   :  { %v4371_v15 = vadd.f32 %v1280_v14, %v1087_v12  ;;  %v1089_v17 = vpop.f32.mrf.mxu0  ;;  %v339_v14 = vpack.c.bf16 %v213_v63, %v206_v62 }
 0x137   :  { %v1282_v18 = vpop.f32.mrf.mxu1 }
 0x138   :  { %4767 = vst [vmem:[#allocation2_spill] sm:$0xff] %v4371_v15  ;;  %v4373_v21 = vadd.f32 %v1282_v18, %v1089_v17  ;;  %v4375_v22 = vpop.f32.mrf.mxu0 }
 0x139   :  { %v4377_v27 = vpop.f32.mrf.mxu1 }
 0x13a   :  { %4768 = vst [vmem:[#allocation3_spill] sm:$0xff] %v4373_v21  ;;  %v1095_v28 = vpop.f32.mrf.mxu0 }
 0x13b   :  { %v1288_v34 = vpop.f32.mrf.mxu1  ;;  %2694 = vmatmul.mubr.msk.bf16.gmra.mxu1 %vm942_vm0, %v325_v20 }
 0x13c   :  { %v4380_v35 = vadd.f32 %v1288_v34, %v1095_v28  ;;  %1722 = vmatprep.mubr.bf16.mxu1 %v3270_v29  ;;  %v1097_v40 = vpop.f32.mrf.mxu0 }
 0x13d   :  { %v1290_v41 = vpop.f32.mrf.mxu1 }
 0x13e   :  { %4769 = vst [vmem:[#allocation4_spill] sm:$0xff] %v4380_v35  ;;  %v4389_v42 = vadd.f32 %v1290_v41, %v1097_v40  ;;  %v1099_v44 = vpop.f32.mrf.mxu0  ;;  %v227_v40 = vld [vmem:[%s4763_s0 + $0x688] sm:$0xff] }
 0x13f   :  { %v1292_v46 = vpop.f32.mrf.mxu1 }
 0x140   :  { %4770 = vst [vmem:[#allocation5_spill] sm:$0xff] %v4389_v42  ;;  %v4391_v50 = vadd.f32 %v1292_v46, %v1099_v44  ;;  %v4393_v53 = vpop.f32.mrf.mxu0 }
 0x141   :  { %4772 = vst [vmem:[#allocation7_spill] sm:$0xff] %v4393_v53  ;;  %v4395_v56 = vpop.f32.mrf.mxu1 }
 0x142   :  { %4771 = vst [vmem:[#allocation6_spill] sm:$0xff] %v4391_v50  ;;  %4773 = vst [vmem:[#allocation8_spill] sm:$0xff] %v4395_v56  ;;  %v1105_v57 = vpop.f32.mrf.mxu0 }
 0x143   :  { %v1298_v58 = vpop.f32.mrf.mxu1  ;;  %2695 = vmatmul.mubr.msk.bf16.gmra.mxu1 %vm942_vm0, %v332_v49 }
 0x144   :  { %v4398_v61 = vadd.f32 %v1298_v58, %v1105_v57  ;;  %1732 = vmatprep.mubr.bf16.mxu1 %v3270_v29  ;;  %v1107_v4 = vpop.f32.mrf.mxu0  ;;  %v346_v58 = vpack.c.bf16 %v227_v40, %v220_v38 }
 0x145   :  { %v1300_v5 = vpop.f32.mrf.mxu1 }
 0x146   :  { %4774 = vst [vmem:[#allocation9_spill] sm:$0xff] %v4398_v61  ;;  %v4407_v10 = vadd.f32 %v1300_v5, %v1107_v4  ;;  %v1109_v11 = vpop.f32.mrf.mxu0 }
 0x147   :  { %v1302_v12 = vpop.f32.mrf.mxu1 }
 0x148   :  { %4775 = vst [vmem:[#allocation10_spill] sm:$0xff] %v4407_v10  ;;  %v4409_v17 = vadd.f32 %v1302_v12, %v1109_v11  ;;  %v4411_v18 = vpop.f32.mrf.mxu0 }
 0x149   :  { %4777 = vst [vmem:[#allocation12_spill] sm:$0xff] %v4411_v18  ;;  %v4413_v20 = vpop.f32.mrf.mxu1 }
 0x14a   :  { %4776 = vst [vmem:[#allocation11_spill] sm:$0xff] %v4409_v17  ;;  %4778 = vst [vmem:[#allocation13_spill] sm:$0xff] %v4413_v20  ;;  %v1115_v28 = vpop.f32.mrf.mxu0 }
 0x14b   :  { %v1308_v34 = vpop.f32.mrf.mxu1  ;;  %2696 = vmatmul.mubr.msk.bf16.gmra.mxu1 %vm942_vm0, %v339_v14  ;;  %v234_v14 = vld [vmem:[%s4763_s0 + $0x6c0] sm:$0xff] }
 0x14c   :  { %v4416_v36 = vadd.f32 %v1308_v34, %v1115_v28  ;;  %1742 = vmatprep.mubr.bf16.mxu1 %v3270_v29  ;;  %v1117_v41 = vpop.f32.mrf.mxu0  ;;  %v241_v28 = vld [vmem:[%s4763_s0 + $0x6f8] sm:$0xff] }
 0x14d   :  { %v1310_v44 = vpop.f32.mrf.mxu1 }
 0x14e   :  { %4779 = vst [vmem:[#allocation14_spill] sm:$0xff] %v4416_v36  ;;  %v4425_v46 = vadd.f32 %v1310_v44, %v1117_v41  ;;  %v1119_v49 = vpop.f32.mrf.mxu0 }
 0x14f   :  { %v1312_v57 = vpop.f32.mrf.mxu1 }
 0x150   :  { %4780 = vst [vmem:[#allocation15_spill] sm:$0xff] %v4425_v46  ;;  %v4427_v62 = vadd.f32 %v1312_v57, %v1119_v49  ;;  %v4429_v63 = vpop.f32.mrf.mxu0  ;;  %v353_v49 = vpack.c.bf16 %v241_v28, %v234_v14 }
 0x151   :  { %4782 = vst [vmem:[#allocation17_spill] sm:$0xff] %v4429_v63  ;;  %v4431_v4 = vpop.f32.mrf.mxu1 }
 0x152   :  { %4781 = vst [vmem:[#allocation16_spill] sm:$0xff] %v4427_v62  ;;  %4783 = vst [vmem:[#allocation18_spill] sm:$0xff] %v4431_v4  ;;  %v1125_v5 = vpop.f32.mrf.mxu0 }
 0x153   :  { %v1318_v11 = vpop.f32.mrf.mxu1  ;;  %2697 = vmatmul.mubr.msk.bf16.gmra.mxu1 %vm942_vm0, %v346_v58 }
 0x154   :  { %v4434_v12 = vadd.f32 %v1318_v11, %v1125_v5  ;;  %1752 = vmatprep.mubr.bf16.mxu1 %v3270_v29  ;;  %v1127_v34 = vpop.f32.mrf.mxu0 }
 0x155   :  { %v1320_v38 = vpop.f32.mrf.mxu1 }
 0x156   :  { %4784 = vst [vmem:[#allocation19_spill] sm:$0xff] %v4434_v12  ;;  %v4443_v40 = vadd.f32 %v1320_v38, %v1127_v34  ;;  %v1129_v41 = vpop.f32.mrf.mxu0 }
 0x157   :  { %v1322_v44 = vpop.f32.mrf.mxu1 }
 0x158   :  { %4785 = vst [vmem:[#allocation20_spill] sm:$0xff] %v4443_v40  ;;  %v4445_v57 = vadd.f32 %v1322_v44, %v1129_v41  ;;  %v4447_v58 = vpop.f32.mrf.mxu0 }
 0x159   :  { %4787 = vst [vmem:[#allocation22_spill] sm:$0xff] %v4447_v58  ;;  %v4449_v29 = vpop.f32.mrf.mxu1 }
 0x15a   :  { %4786 = vst [vmem:[#allocation21_spill] sm:$0xff] %v4445_v57  ;;  %4788 = vst [vmem:[#allocation23_spill] sm:$0xff] %v4449_v29  ;;  %v1135_v5 = vpop.f32.mrf.mxu0 }
 0x15b   :  { %v1328_v11 = vpop.f32.mrf.mxu1  ;;  %2698 = vmatmul.mubr.msk.bf16.gmra.mxu1 %vm942_vm0, %v353_v49 }
 0x15c   :  { %v4452_v12 = vadd.f32 %v1328_v11, %v1135_v5  ;;  %v1137_v62 = vpop.f32.mrf.mxu0 }
 0x15d   :  { %v1330_v46 = vpop.f32.mrf.mxu1 }
 0x15e   :  { %4789 = vst [vmem:[#allocation24_spill] sm:$0xff] %v4452_v12  ;;  %v4454_v4 = vadd.f32 %v1330_v46, %v1137_v62  ;;  %v1139_v34 = vpop.f32.mrf.mxu0 }
 0x15f   :  { %v1332_v38 = vpop.f32.mrf.mxu1 }
 0x160   :  { %4790 = vst [vmem:[#allocation25_spill] sm:$0xff] %v4454_v4  ;;  %v4456_v40 = vadd.f32 %v1332_v38, %v1139_v34  ;;  %v4458_v14 = vpop.f32.mrf.mxu0 }
 0x161   :  { %4792 = vst [vmem:[#allocation27_spill] sm:$0xff] %v4458_v14  ;;  %v4460_v28 = vpop.f32.mrf.mxu1 }
 0x162   :  { %4791 = vst [vmem:[#allocation26_spill] sm:$0xff] %v4456_v40  ;;  %4793 = vst [vmem:[#allocation28_spill] sm:$0xff] %v4460_v28  ;;  %v1145_v41 = vpop.f32.mrf.mxu0 }
 0x163   :  { %v1338_v44 = vpop.f32.mrf.mxu1 }
 0x164   :  { %v1339_v57 = vadd.f32 %v1338_v44, %v1145_v41  ;;  %v1147_v29 = vpop.f32.mrf.mxu0 }
 0x165   :  { %v1340_v58 = vpop.f32.mrf.mxu1 }
 0x166   :  { %v1341_v49 = vadd.f32 %v1340_v58, %v1147_v29  ;;  %v1149_v5 = vpop.f32.mrf.mxu0 }
 0x167   :  { %v1342_v11 = vpop.f32.mrf.mxu1 }
 0x168   :  { %v1343_v12 = vadd.f32 %v1342_v11, %v1149_v5  ;;  %v4462_v63 = vpop.f32.mrf.mxu0 }
 0x169   :  { %4794 = vst [vmem:[#allocation29_spill] sm:$0xff] %v4462_v63  ;;  %v4464_v46 = vpop.f32.mrf.mxu1 }
 0x16a   :  { %4795 = vst [vmem:[#allocation30_spill] sm:$0xff] %v4464_v46  ;;  %v1155_v62 = vpop.f32.mrf.mxu0 }
 0x16b   :  { %v1348_v34 = vpop.f32.mrf.mxu1 }
 0x16c   :  { %v1349_v38 = vadd.f32 %v1348_v34, %v1155_v62  ;;  %v1157_v40 = vpop.f32.mrf.mxu0 }
 0x16d   :  { %v1350_v4 = vpop.f32.mrf.mxu1 }
 0x16e   :  { %v1351_v14 = vadd.f32 %v1350_v4, %v1157_v40  ;;  %v1159_v28 = vpop.f32.mrf.mxu0 }
 0x16f   :  { %v1352_v36 = vpop.f32.mrf.mxu1 }
 0x170   :  { %v1353_v17 = vadd.f32 %v1352_v36, %v1159_v28  ;;  %v4466_v41 = vpop.f32.mrf.mxu0 }
 0x171   :  { %4796 = vst [vmem:[#allocation31_spill] sm:$0xff] %v4466_v41  ;;  %v4468_v44 = vpop.f32.mrf.mxu1 }
 0x172   :  { %4797 = vst [vmem:[#allocation32_spill] sm:$0xff] %v4468_v44  ;;  %v1165_v58 = vpop.f32.mrf.mxu0 }
 0x173   :  { %v1358_v29 = vpop.f32.mrf.mxu1 }
 0x174   :  { %v1359_v5 = vadd.f32 %v1358_v29, %v1165_v58  ;;  %v1167_v11 = vpop.f32.mrf.mxu0 }
 0x175   :  { %v1360_v63 = vpop.f32.mrf.mxu1 }
 0x176   :  { %v1361_v10 = vadd.f32 %v1360_v63, %v1167_v11  ;;  %v1169_v46 = vpop.f32.mrf.mxu0 }
 0x177   :  { %v1362_v20 = vpop.f32.mrf.mxu1 }
 0x178   :  { %v1363_v18 = vadd.f32 %v1362_v20, %v1169_v46  ;;  %v4470_v62 = vpop.f32.mrf.mxu0 }
 0x179   :  { %4798 = vst [vmem:[#allocation33_spill] sm:$0xff] %v4470_v62  ;;  %v4472_v34 = vpop.f32.mrf.mxu1 }
 0x17a   :  { %4799 = vst [vmem:[#allocation34_spill] sm:$0xff] %v4472_v34  ;;  %v1175_v4 = vpop.f32.mrf.mxu0 }
 0x17b   :  { %v1368_v40 = vpop.f32.mrf.mxu1 }
 0x17c   :  { %v1369_v36 = vadd.f32 %v1368_v40, %v1175_v4  ;;  %v1177_v28 = vpop.f32.mrf.mxu0 }
 0x17d   :  { %v1370_v41 = vpop.f32.mrf.mxu1 }
 0x17e   :  { %v1371_v61 = vadd.f32 %v1370_v41, %v1177_v28  ;;  %v1179_v44 = vpop.f32.mrf.mxu0 }
 0x17f   :  { %v1372_v50 = vpop.f32.mrf.mxu1 }
 0x180   :  { %v1373_v42 = vadd.f32 %v1372_v50, %v1179_v44  ;;  %v4474_v58 = vpop.f32.mrf.mxu0 }
 0x181   :  { %4800 = vst [vmem:[#allocation35_spill] sm:$0xff] %v4474_v58  ;;  %v4476_v29 = vpop.f32.mrf.mxu1 }
 0x182   :  { %4801 = vst [vmem:[#allocation36_spill] sm:$0xff] %v4476_v29  ;;  %v1411_v63 = vpop.f32.mrf.mxu0 }
 0x183   :  { %v1531_v11 = vpop.f32.mrf.mxu1 }
 0x184   :  { %v4478_v20 = vadd.f32 %v1531_v11, %v1339_v57  ;;  %v1413_v46 = vpop.f32.mrf.mxu0 }
 0x185   :  { %v1533_v62 = vpop.f32.mrf.mxu1 }
 0x186   :  { %4802 = vst [vmem:[#allocation37_spill] sm:$0xff] %v4478_v20  ;;  %v4480_v34 = vadd.f32 %v1533_v62, %v1341_v49  ;;  %v1415_v56 = vpop.f32.mrf.mxu0 }
 0x187   :  { %v1535_v4 = vpop.f32.mrf.mxu1 }
 0x188   :  { %4803 = vst [vmem:[#allocation38_spill] sm:$0xff] %v4480_v34  ;;  %v4482_v40 = vadd.f32 %v1535_v4, %v1343_v12  ;;  %v1417_v41 = vpop.f32.mrf.mxu0 }
 0x189   :  { %v4484_v28 = vpop.f32.mrf.mxu1 }
 0x18a   :  { %4804 = vst [vmem:[#allocation39_spill] sm:$0xff] %v4482_v40  ;;  %4805 = vst [vmem:[#allocation40_spill] sm:$0xff] %v4484_v28  ;;  %v1421_v50 = vpop.f32.mrf.mxu0 }
 0x18b   :  { %v1541_v44 = vpop.f32.mrf.mxu1 }
 0x18c   :  { %v4486_v58 = vadd.f32 %v1541_v44, %v1349_v38  ;;  %v4488_v29 = vpop.f32.mrf.mxu0 }
 0x18d   :  { %v1543_v53 = vpop.f32.mrf.mxu1 }
 0x18e   :  { %4806 = vst [vmem:[#allocation41_spill] sm:$0xff] %v4486_v58  ;;  %v4490_v57 = vadd.f32 %v1543_v53, %v1351_v14  ;;  %v1425_v11 = vpop.f32.mrf.mxu0 }
 0x18f   :  { %v1545_v20 = vpop.f32.mrf.mxu1 }
 0x190   :  { %4807 = vst [vmem:[#allocation42_spill] sm:$0xff] %v4490_v57  ;;  %v4492_v49 = vadd.f32 %v1545_v20, %v1353_v17  ;;  %v4494_v62 = vpop.f32.mrf.mxu0 }
 0x191   :  { %v4496_v12 = vpop.f32.mrf.mxu1 }
 0x192   :  { %4808 = vst [vmem:[#allocation43_spill] sm:$0xff] %v4492_v49  ;;  %4809 = vst [vmem:[#allocation44_spill] sm:$0xff] %v4496_v12  ;;  %v4498_v4 = vpop.f32.mrf.mxu0 }
 0x193   :  { %v1551_v40 = vpop.f32.mrf.mxu1 }
 0x194   :  { %v4500_v34 = vadd.f32 %v1551_v40, %v1359_v5  ;;  %v4502_v38 = vpop.f32.mrf.mxu0 }
 0x195   :  { %v1553_v44 = vpop.f32.mrf.mxu1 }
 0x196   :  { %4810 = vst [vmem:[#allocation45_spill] sm:$0xff] %v4500_v34  ;;  %v4504_v58 = vadd.f32 %v1553_v44, %v1361_v10  ;;  %v4506_v53 = vpop.f32.mrf.mxu0 }
 0x197   :  { %v1555_v14 = vpop.f32.mrf.mxu1 }
 0x198   :  { %4811 = vst [vmem:[#allocation46_spill] sm:$0xff] %v4504_v58  ;;  %v4508_v57 = vadd.f32 %v1555_v14, %v1363_v18  ;;  %v4510_v17 = vpop.f32.mrf.mxu0 }
 0x199   :  { %v4512_v20 = vpop.f32.mrf.mxu1 }
 0x19a   :  { %4812 = vst [vmem:[#allocation47_spill] sm:$0xff] %v4508_v57  ;;  %4813 = vst [vmem:[#allocation48_spill] sm:$0xff] %v4512_v20  ;;  %v4514_v49 = vpop.f32.mrf.mxu0  ;;  %v1412_v57 = vadd.f32 %v1411_v63, %v4209_v16 }
 0x19b   :  { %v1561_v12 = vpop.f32.mrf.mxu1 }
 0x19c   :  { %v4516_v28 = vadd.f32 %v1561_v12, %v1369_v36  ;;  %v4518_v5 = vpop.f32.mrf.mxu0 }
 0x19d   :  { %v1563_v40 = vpop.f32.mrf.mxu1 }
 0x19e   :  { %4814 = vst [vmem:[#allocation49_spill] sm:$0xff] %v4516_v28  ;;  %v4520_v34 = vadd.f32 %v1563_v40, %v1371_v61  ;;  %v4522_v10 = vpop.f32.mrf.mxu0  ;;  %v1225_v61 = vadd.f32 %v4233_v33, %v4231_v32  ;;  %v1414_v40 = vadd.f32 %v1413_v46, %v4227_v24  ;;  %v3262_v32 = vld [vmem:[%s4765_s3 + $0x38] sm:$0xff]  }
 0x19f   :  { %v1565_v44 = vpop.f32.mrf.mxu1  ;;  %3018 = vmatprep.subr.bf16.mxu1 %v3262_v32 }
 0x1a0   :  { %4815 = vst [vmem:[#allocation50_spill] sm:$0xff] %v4520_v34  ;;  %v4524_v58 = vadd.f32 %v1565_v44, %v1373_v42  ;;  %v4526_v18 = vpop.f32.mrf.mxu0  ;;  %v1416_v42 = vadd.f32 %v1415_v56, %v4229_v30  ;;  %v1418_v34 = vadd.f32 %v1417_v41, %v1225_v61  ;;  %v3263_v30 = vld [vmem:[%s4765_s3 + $0x30] sm:$0xff]   ;;  %3019 = vmatpush3.bf16.msra.mxu1 %v3262_v32 }
 0x1a1   :  { %v4528_v14 = vpop.f32.mrf.mxu1  ;;  %v1424_v61 = vadd.f32 %v4488_v29, %v4257_v45  ;;  %3020 = vmatprep.subr.bf16.mxu1 %v3263_v30 }
 0x1a2   :  { %4816 = vst [vmem:[#allocation51_spill] sm:$0xff] %v4524_v58  ;;  %4817 = vst [vmem:[#allocation52_spill] sm:$0xff] %v4528_v14  ;;  %v4531_v20 = vpop.f32.mrf.mxu0 }
 0x1a3   :  { %v1604_v36 = vpop.f32.mrf.mxu1 }
 0x1a4   :  { %v1605_v12 = vadd.f32 %v1604_v36, %v1412_v57  ;;  %v4533_v28 = vpop.f32.mrf.mxu0  ;;  %3021 = vmatpush3.bf16.msra.mxu1 %v3263_v30  ;;  %v1245_v30 = vadd.f32 %v4293_v8, %v4291_v7 }
 0x1a5   :  { %v1606_v35 = vpop.f32.mrf.mxu1 }
 0x1a6   :  { %v4539_v44 = vpop.f32.mrf.mxu0  ;;  %v1607_v14 = vadd.f32 %v1606_v35, %v1414_v40  ;;  %v1763_v63 = vmax.f32 %v1605_v12, 0.0  ;;  %v1422_v35 = vadd.f32 %v1421_v50, %v4239_v37  ;;  %v1426_v40 = vadd.f32 %v1425_v11, %v4265_v52  ;;  %v3264_v37 = vld [vmem:[%s4765_s3 + $0x28] sm:$0xff]  }
 0x1a7   :  { %v1608_v58 = vpop.f32.mrf.mxu1  ;;  %3022 = vmatprep.subr.bf16.mxu1 %v3264_v37 }
 0x1a8   :  { %v1609_v16 = vadd.f32 %v1608_v58, %v1416_v42  ;;  %v4541_v21 = vpop.f32.mrf.mxu0  ;;  %v1764_v56 = vmax.f32 %v1607_v14, 0.0  ;;  %3023 = vmatpush3.bf16.msra.mxu1 %v3264_v37 }
 0x1a9   :  { %v1610_v57 = vpop.f32.mrf.mxu1 }
 0x1aa   :  { %v1765_v36 = vmax.f32 %v1609_v16, 0.0  ;;  %v1611_v15 = vadd.f32 %v1610_v57, %v1418_v34  ;;  %v4546_v33 = vpop.f32.mrf.mxu0  ;;  %v1235_v34 = vadd.f32 %v4269_v55, %v4267_v54  ;;  %v3265_v57 = vld [vmem:[%s4765_s3 + $0x20] sm:$0xff]  }
 0x1ab   :  { %v1614_v24 = vpop.f32.mrf.mxu1  ;;  %3024 = vmatprep.subr.bf16.mxu1 %v3265_v57 }
 0x1ac   :  { %v1827_v58 = vpack.c.bf16 %v1765_v36, %v1763_v63  ;;  %v1766_v46 = vmax.f32 %v1611_v15, 0.0  ;;  %v4554_v41 = vpop.f32.mrf.mxu0  ;;  %v1615_v16 = vadd.f32 %v1614_v24, %v1422_v35  ;;  %v1428_v54 = vadd.f32 %v4494_v62, %v1235_v34  ;;  %3025 = vmatpush3.bf16.msra.mxu1 %v3265_v57 }
 0x1ad   :  { %v1616_v12 = vpop.f32.mrf.mxu1  ;;  %v1432_v62 = vadd.f32 %v4498_v4, %v4275_v59  ;;  %v1434_v34 = vadd.f32 %v4502_v38, %v4287_v1  ;;  %v1446_v57 = vadd.f32 %v4522_v10, %v4313_v23  ;;  %v1452_v10 = vadd.f32 %v4531_v20, %v4320_v31 }
 0x1ae   :  { %v1828_v42 = vpack.c.bf16 %v1766_v46, %v1764_v56  ;;  %v4562_v15 = vpop.f32.mrf.mxu0  ;;  %v1617_v55 = vadd.f32 %v1616_v12, %v1424_v61  ;;  %v1767_v52 = vmax.f32 %v1615_v16, 0.0  ;;  %v1436_v12 = vadd.f32 %v4506_v53, %v4289_v6 }
 0x1af   :  { %v1618_v50 = vpop.f32.mrf.mxu1 }
 0x1b0   :  { %v1619_v14 = vadd.f32 %v1618_v50, %v1426_v40  ;;  %2019 = vmatprep.mubr.bf16.mxu0 %v1828_v42  ;;  %v4565_v63 = vpop.f32.mrf.mxu0  ;;  %v1768_v24 = vmax.f32 %v1617_v55, 0.0  ;;  %v1438_v42 = vadd.f32 %v4510_v17, %v1245_v30 }
 0x1b1   :  { %v1620_v45 = vpop.f32.mrf.mxu1  ;;  %2020 = vmatmul.mubr.bf16.vlgmr.msra.gmra.mxu0 %v1827_v58 }
 0x1b2   :  { %v1769_v29 = vmax.f32 %v1619_v14, 0.0  ;;  %v1621_v11 = vadd.f32 %v1620_v45, %v1428_v54  ;;  %v4570_v36 = vpop.f32.mrf.mxu0  ;;  %v1442_v54 = vadd.f32 %v4514_v49, %v4302_v13  ;;  %v1255_v45 = vadd.f32 %v4317_v26, %v4315_v25 }
 0x1b3   :  { %v1624_v32 = vpop.f32.mrf.mxu1 }
 0x1b4   :  { %v1829_v35 = vpack.c.bf16 %v1769_v29, %v1767_v52  ;;  %v1770_v56 = vmax.f32 %v1621_v11, 0.0  ;;  %v4576_v58 = vpop.f32.mrf.mxu0  ;;  %v1625_v40 = vadd.f32 %v1624_v32, %v1432_v62  ;;  %v1444_v11 = vadd.f32 %v4518_v5, %v4311_v19 }
 0x1b5   :  { %v1626_v46 = vpop.f32.mrf.mxu1  ;;  %v1448_v49 = vadd.f32 %v4526_v18, %v1255_v45  ;;  %v1265_v18 = vadd.f32 %v4341_v48, %v4339_v47  ;;  %v1464_v45 = vadd.f32 %v4554_v41, %v4353_v60  ;;  %v1472_v60 = vadd.f32 %v4570_v36, %v4362_v9 }
 0x1b6   :  { %v1830_v61 = vpack.c.bf16 %v1770_v56, %v1768_v24  ;;  %v4582_v59 = vpop.f32.mrf.mxu0  ;;  %v1627_v16 = vadd.f32 %v1626_v46, %v1434_v34  ;;  %v1771_v1 = vmax.f32 %v1625_v40, 0.0 }
 0x1b7   :  { %v1628_v4 = vpop.f32.mrf.mxu1  ;;  %v1458_v31 = vadd.f32 %v4541_v21, %v1265_v18  ;;  %v1275_v21 = vadd.f32 %v4359_v3, %v4357_v2 }
 0x1b8   :  { %v1629_v7 = vadd.f32 %v1628_v4, %v1436_v12  ;;  %2027 = vmatprep.mubr.bf16.mxu0 %v1830_v61  ;;  %v4585_v8 = vpop.f32.mrf.mxu0  ;;  %v1772_v55 = vmax.f32 %v1627_v16, 0.0  ;;  %v1456_v16 = vadd.f32 %v4539_v44, %v4331_v43 }
 0x1b9   :  { %v1630_v37 = vpop.f32.mrf.mxu1  ;;  %2028 = vmatmul.mubr.bf16.gmra.mxu0 %v1829_v35 }
 0x1ba   :  { %v1773_v38 = vmax.f32 %v1629_v7, 0.0  ;;  %v1631_v50 = vadd.f32 %v1630_v37, %v1438_v42  ;;  %v4587_v6 = vpop.f32.mrf.mxu0  ;;  %v1454_v42 = vadd.f32 %v4533_v28, %v4329_v39  ;;  %v1462_v39 = vadd.f32 %v4546_v33, %v4344_v51 }
 0x1bb   :  { %v1634_v53 = vpop.f32.mrf.mxu1  ;;  %v1468_v51 = vadd.f32 %v4565_v63, %v1275_v21  ;;  %v1285_v63 = vadd.f32 %v4377_v27, %v4375_v22 }
 0x1bc   :  { %v1831_v14 = vpack.c.bf16 %v1773_v38, %v1771_v1  ;;  %v1774_v17 = vmax.f32 %v1631_v50, 0.0  ;;  %v4593_v52 = vpop.f32.mrf.mxu0  ;;  %v1635_v62 = vadd.f32 %v1634_v53, %v1442_v54 }
 0x1bd   :  { %v1636_v29 = vpop.f32.mrf.mxu1  ;;  %v1478_v9 = vadd.f32 %v4585_v8, %v1285_v63 }
 0x1be   :  { %v1832_v32 = vpack.c.bf16 %v1774_v17, %v1772_v55  ;;  %v4599_v24 = vpop.f32.mrf.mxu0  ;;  %v1637_v35 = vadd.f32 %v1636_v29, %v1444_v11  ;;  %v1775_v30 = vmax.f32 %v1635_v62, 0.0  ;;  %v1466_v29 = vadd.f32 %v4562_v15, %v4355_v0 }
 0x1bf   :  { %v1638_v13 = vpop.f32.mrf.mxu1 }
 0x1c0   :  { %v1639_v56 = vadd.f32 %v1638_v13, %v1446_v57  ;;  %2035 = vmatprep.mubr.bf16.mxu0 %v1832_v32  ;;  %v4602_v25 = vpop.f32.mrf.mxu0  ;;  %v1776_v34 = vmax.f32 %v1637_v35, 0.0 }
 0x1c1   :  { %v1640_v26 = vpop.f32.mrf.mxu1  ;;  %2036 = vmatmul.mubr.bf16.gmra.mxu0 %v1831_v14 }
 0x1c2   :  { %v1777_v46 = vmax.f32 %v1639_v56, 0.0  ;;  %v1641_v19 = vadd.f32 %v1640_v26, %v1448_v49  ;;  %v4604_v5 = vpop.f32.mrf.mxu0 }
 0x1c3   :  { %v1644_v23 = vpop.f32.mrf.mxu1 }
 0x1c4   :  { %v1833_v12 = vpack.c.bf16 %v1777_v46, %v1775_v30  ;;  %v1778_v61 = vmax.f32 %v1641_v19, 0.0  ;;  %v4610_v40 = vpop.f32.mrf.mxu0  ;;  %v1645_v37 = vadd.f32 %v1644_v23, %v1452_v10  ;;  %v4818_v46 = vld [vmem:[#allocation2_spill] sm:$0xff]  ;;  %v4819_v23 = vld [vmem:[#allocation3_spill] sm:$0xff] }
 0x1c5   :  { %v1646_v4 = vpop.f32.mrf.mxu1  ;;  %v1474_v19 = vadd.f32 %v4576_v58, %v4818_v46  ;;  %v1476_v10 = vadd.f32 %v4582_v59, %v4819_v23 }
 0x1c6   :  { %v1834_v7 = vpack.c.bf16 %v1778_v61, %v1776_v34  ;;  %v1647_v20 = vadd.f32 %v1646_v4, %v1454_v42  ;;  %v4617_v50 = vpop.f32.mrf.mxu0  ;;  %v1779_v48 = vmax.f32 %v1645_v37, 0.0  ;;  %v4820_v37 = vld [vmem:[#allocation4_spill] sm:$0xff] }
 0x1c7   :  { %v1648_v1 = vpop.f32.mrf.mxu1  ;;  %v1482_v58 = vadd.f32 %v4587_v6, %v4820_v37 }
 0x1c8   :  { %v1649_v38 = vadd.f32 %v1648_v1, %v1456_v16  ;;  %2043 = vmatprep.mubr.bf16.mxu0 %v1834_v7  ;;  %v1780_v43 = vmax.f32 %v1647_v20, 0.0  ;;  %v4623_v14 = vpop.f32.mrf.mxu0  ;;  %v4821_v20 = vld [vmem:[#allocation7_spill] sm:$0xff] }
 0x1c9   :  { %v1650_v47 = vpop.f32.mrf.mxu1  ;;  %2044 = vmatmul.mubr.bf16.gmra.mxu0 %v1833_v12 }
 0x1ca   :  { %v1781_v53 = vmax.f32 %v1649_v38, 0.0  ;;  %v1651_v54 = vadd.f32 %v1650_v47, %v1458_v31  ;;  %v4630_v13 = vpop.f32.mrf.mxu0  ;;  %v4822_v38 = vld [vmem:[#allocation8_spill] sm:$0xff] }
 0x1cb   :  { %v1654_v55 = vpop.f32.mrf.mxu1  ;;  %v1295_v47 = vadd.f32 %v4822_v38, %v4821_v20 }
 0x1cc   :  { %v1835_v28 = vpack.c.bf16 %v1781_v53, %v1779_v48  ;;  %v1782_v44 = vmax.f32 %v1651_v54, 0.0  ;;  %v1655_v57 = vadd.f32 %v1654_v55, %v1462_v39  ;;  %v4636_v26 = vpop.f32.mrf.mxu0  ;;  %v4823_v53 = vld [vmem:[#allocation5_spill] sm:$0xff]  ;;  %v4824_v55 = vld [vmem:[#allocation6_spill] sm:$0xff] }
 0x1cd   :  { %v1656_v17 = vpop.f32.mrf.mxu1  ;;  %v1484_v54 = vadd.f32 %v4593_v52, %v4823_v53  ;;  %v1486_v39 = vadd.f32 %v4599_v24, %v4824_v55  ;;  %v1488_v21 = vadd.f32 %v4602_v25, %v1295_v47 }
 0x1ce   :  { %v1836_v11 = vpack.c.bf16 %v1782_v44, %v1780_v43  ;;  %v1657_v33 = vadd.f32 %v1656_v17, %v1464_v45  ;;  %v1783_v3 = vmax.f32 %v1655_v57, 0.0  ;;  %v1505_v4 = vpop.f32.mrf.mxu0 }
 0x1cf   :  { %v1658_v32 = vpop.f32.mrf.mxu1 }
 0x1d0   :  { %v1659_v62 = vadd.f32 %v1658_v32, %v1466_v29  ;;  %2051 = vmatprep.mubr.bf16.mxu0 %v1836_v11  ;;  %v1784_v0 = vmax.f32 %v1657_v33, 0.0  ;;  %v1507_v8 = vpop.f32.mrf.mxu0  ;;  %v4825_v33 = vld [vmem:[#allocation9_spill] sm:$0xff] }
 0x1d1   :  { %v1660_v2 = vpop.f32.mrf.mxu1  ;;  %2052 = vmatmul.mubr.bf16.gmra.mxu0 %v1835_v28  ;;  %v1492_v52 = vadd.f32 %v4604_v5, %v4825_v33  ;;  %v4838_v33 = vld [vmem:[#allocation20_spill] sm:$0xff] }
 0x1d2   :  { %v1785_v49 = vmax.f32 %v1659_v62, 0.0  ;;  %v1661_v35 = vadd.f32 %v1660_v2, %v1468_v51  ;;  %v1511_v45 = vpop.f32.mrf.mxu0 }
 0x1d3   :  { %v1664_v56 = vpop.f32.mrf.mxu1 }
 0x1d4   :  { %v1837_v41 = vpack.c.bf16 %v1785_v49, %v1783_v3  ;;  %v1786_v15 = vmax.f32 %v1661_v35, 0.0  ;;  %v1665_v12 = vadd.f32 %v1664_v56, %v1472_v60  ;;  %v4826_v3 = vld [vmem:[#allocation12_spill] sm:$0xff]  ;;  %v4827_v49 = vld [vmem:[#allocation13_spill] sm:$0xff]  ;;  %v1513_v25 = vpop.f32.mrf.mxu0  ;;  %v4828_v60 = vld [vmem:[#allocation10_spill] sm:$0xff] }
 0x1d5   :  { %v1666_v30 = vpop.f32.mrf.mxu1  ;;  %v1305_v35 = vadd.f32 %v4827_v49, %v4826_v3 }
 0x1d6   :  { %v1838_v34 = vpack.c.bf16 %v1786_v15, %v1784_v0  ;;  %v1667_v36 = vadd.f32 %v1666_v30, %v1474_v19  ;;  %v1787_v22 = vmax.f32 %v1665_v12, 0.0  ;;  %v1494_v0 = vadd.f32 %v4610_v40, %v4828_v60  ;;  %v3267_v60 = vld [vmem:[%s4765_s3 + $0x10] sm:$0xff]  }
 0x1d7   :  { %v1668_v61 = vpop.f32.mrf.mxu1  ;;  %v1498_v19 = vadd.f32 %v4623_v14, %v1305_v35 }
 0x1d8   :  { %v1669_v18 = vadd.f32 %v1668_v61, %v1476_v10  ;;  %2059 = vmatprep.mubr.bf16.mxu0 %v1838_v34  ;;  %v1788_v1 = vmax.f32 %v1667_v36, 0.0  ;;  %v1515_v10 = vpop.f32.mrf.mxu0 }
 0x1d9   :  { %v1670_v42 = vpop.f32.mrf.mxu1  ;;  %2060 = vmatmul.mubr.bf16.gmra.mxu0 %v1837_v41  ;;  %v4829_v41 = vld [vmem:[#allocation11_spill] sm:$0xff] }
 0x1da   :  { %v1789_v27 = vmax.f32 %v1669_v18, 0.0  ;;  %v1671_v16 = vadd.f32 %v1670_v42, %v1478_v9  ;;  %v1496_v15 = vadd.f32 %v4617_v50, %v4829_v41  ;;  %v4830_v18 = vld [vmem:[#allocation14_spill] sm:$0xff]  ;;  %v1517_v14 = vpop.f32.mrf.mxu0 }
 0x1db   :  { %v1674_v7 = vpop.f32.mrf.mxu1  ;;  %v1502_v40 = vadd.f32 %v4630_v13, %v4830_v18 }
 0x1dc   :  { %v1839_v59 = vpack.c.bf16 %v1789_v27, %v1787_v22  ;;  %v1790_v31 = vmax.f32 %v1671_v16, 0.0  ;;  %v1675_v28 = vadd.f32 %v1674_v7, %v1482_v58  ;;  %v4831_v27 = vld [vmem:[#allocation17_spill] sm:$0xff]  ;;  %v4832_v16 = vld [vmem:[#allocation18_spill] sm:$0xff]  ;;  %v4833_v58 = vld [vmem:[#allocation15_spill] sm:$0xff]  ;;  %v1521_v13 = vpop.f32.mrf.mxu0 }
 0x1dd   :  { %v1676_v48 = vpop.f32.mrf.mxu1  ;;  %v1315_v7 = vadd.f32 %v4832_v16, %v4831_v27 }
 0x1de   :  { %v1840_v43 = vpack.c.bf16 %v1790_v31, %v1788_v1  ;;  %v1677_v6 = vadd.f32 %v1676_v48, %v1484_v54  ;;  %v1791_v11 = vmax.f32 %v1675_v28, 0.0  ;;  %v1504_v1 = vadd.f32 %v4636_v26, %v4833_v58 }
 0x1df   :  { %v1678_v44 = vpop.f32.mrf.mxu1  ;;  %v1508_v48 = vadd.f32 %v1507_v8, %v1315_v7  ;;  %v4836_v8 = vld [vmem:[#allocation22_spill] sm:$0xff] }
 0x1e0   :  { %v1679_v17 = vadd.f32 %v1678_v44, %v1486_v39  ;;  %2067 = vmatprep.mubr.bf16.mxu0 %v1840_v43  ;;  %v1792_v62 = vmax.f32 %v1677_v6, 0.0 }
 0x1e1   :  { %v1680_v29 = vpop.f32.mrf.mxu1  ;;  %2068 = vmatmul.mubr.bf16.gmra.mxu0 %v1839_v59  ;;  %v4834_v59 = vld [vmem:[#allocation16_spill] sm:$0xff] }
 0x1e2   :  { %v1793_v57 = vmax.f32 %v1679_v17, 0.0  ;;  %v1681_v32 = vadd.f32 %v1680_v29, %v1488_v21  ;;  %v1506_v31 = vadd.f32 %v1505_v4, %v4834_v59  ;;  %v4835_v21 = vld [vmem:[#allocation19_spill] sm:$0xff]  ;;  %v3266_v4 = vld [vmem:[%s4765_s3 + $0x18] sm:$0xff]  }
 0x1e3   :  { %v1684_v51 = vpop.f32.mrf.mxu1  ;;  %v1512_v6 = vadd.f32 %v1511_v45, %v4835_v21  ;;  %3026 = vmatprep.subr.bf16.mxu1 %v3266_v4 }
 0x1e4   :  { %v1841_v24 = vpack.c.bf16 %v1793_v57, %v1791_v11  ;;  %v1794_v2 = vmax.f32 %v1681_v32, 0.0  ;;  %v1685_v30 = vadd.f32 %v1684_v51, %v1492_v52  ;;  %v4837_v11 = vld [vmem:[#allocation23_spill] sm:$0xff]  ;;  %v1523_v32 = vpop.f32.mrf.mxu0  ;;  %v1514_v52 = vadd.f32 %v1513_v25, %v4838_v33  ;;  %3027 = vmatpush3.bf16.msra.mxu1 %v3266_v4 }
 0x1e5   :  { %v1686_v56 = vpop.f32.mrf.mxu1  ;;  %v1325_v57 = vadd.f32 %v4837_v11, %v4836_v8  ;;  %3028 = vmatprep.subr.bf16.mxu1 %v3267_v60  ;;  %v4850_v8 = vld [vmem:[#allocation39_spill] sm:$0xff] }
 0x1e6   :  { %v1842_v63 = vpack.c.bf16 %v1794_v2, %v1792_v62  ;;  %v1687_v5 = vadd.f32 %v1686_v56, %v1494_v0  ;;  %v1795_v12 = vmax.f32 %v1685_v30, 0.0  ;;  %v4839_v62 = vld [vmem:[#allocation21_spill] sm:$0xff]  ;;  %v1525_v0 = vpop.f32.mrf.mxu0 }
 0x1e7   :  { %v1688_v46 = vpop.f32.mrf.mxu1  ;;  %v1518_v49 = vadd.f32 %v1517_v14, %v1325_v57 }
 0x1e8   :  { %v1689_v23 = vadd.f32 %v1688_v46, %v1496_v15  ;;  %2075 = vmatprep.mubr.bf16.mxu0 %v1842_v63  ;;  %v1796_v42 = vmax.f32 %v1687_v5, 0.0  ;;  %3029 = vmatpush3.bf16.msra.mxu1 %v3267_v60  ;;  %v4840_v46 = vld [vmem:[#allocation24_spill] sm:$0xff]  ;;  %v4853_v60 = vld [vmem:[#allocation41_spill] sm:$0xff] }
 0x1e9   :  { %v1690_v34 = vpop.f32.mrf.mxu1  ;;  %2076 = vmatmul.mubr.bf16.gmra.mxu0 %v1841_v24  ;;  %v1516_v24 = vadd.f32 %v1515_v10, %v4839_v62 }
 0x1ea   :  { %v1797_v61 = vmax.f32 %v1689_v23, 0.0  ;;  %v1691_v9 = vadd.f32 %v1690_v34, %v1498_v19  ;;  %v1522_v19 = vadd.f32 %v1521_v13, %v4840_v46  ;;  %v3268_v34 = vld [vmem:[%s4765_s3 + $0x8] sm:$0xff]  }
 0x1eb   :  { %v1694_v36 = vpop.f32.mrf.mxu1  ;;  %3030 = vmatprep.subr.bf16.mxu1 %v3268_v34  ;;  %v4856_v46 = vld [vmem:[#allocation43_spill] sm:$0xff] }
 0x1ec   :  { %v1843_v50 = vpack.c.bf16 %v1797_v61, %v1795_v12  ;;  %v1798_v22 = vmax.f32 %v1691_v9, 0.0  ;;  %v1695_v38 = vadd.f32 %v1694_v36, %v1502_v40  ;;  %v4841_v12 = vld [vmem:[#allocation27_spill] sm:$0xff]  ;;  %v4842_v61 = vld [vmem:[#allocation28_spill] sm:$0xff]  ;;  %v1527_v36 = vpop.f32.mrf.mxu0  ;;  %v4843_v40 = vld [vmem:[#allocation25_spill] sm:$0xff]  ;;  %3031 = vmatpush3.bf16.msra.mxu1 %v3268_v34 }
 0x1ed   :  { %v1696_v37 = vpop.f32.mrf.mxu1  ;;  %v1335_v9 = vadd.f32 %v4842_v61, %v4841_v12 }
 0x1ee   :  { %v1844_v20 = vpack.c.bf16 %v1798_v22, %v1796_v42  ;;  %v1697_v53 = vadd.f32 %v1696_v37, %v1504_v1  ;;  %v1799_v39 = vmax.f32 %v1695_v38, 0.0  ;;  %v1524_v42 = vadd.f32 %v1523_v32, %v4843_v40  ;;  %v3269_v1 = vld [vmem:[%s4765_s3] sm:$0xff]   ;;  %v4857_v40 = vld [vmem:[#allocation33_spill] sm:$0xff] }
 0x1ef   :  { %v1698_v47 = vpop.f32.mrf.mxu1  ;;  %v1528_v14 = vadd.f32 %v1527_v36, %v1335_v9  ;;  %3032 = vmatprep.subr.bf16.mxu1 %v3269_v1 }
 0x1f0   :  { %v1699_v54 = vadd.f32 %v1698_v47, %v1506_v31  ;;  %2083 = vmatprep.mubr.bf16.mxu0 %v1844_v20  ;;  %v1800_v17 = vmax.f32 %v1697_v53, 0.0  ;;  %3033 = vmatpush3.bf16.msra.mxu1 %v3269_v1 }
 0x1f1   :  { %v1700_v55 = vpop.f32.mrf.mxu1  ;;  %2084 = vmatmul.mubr.bf16.gmra.mxu0 %v1843_v50  ;;  %v4844_v50 = vld [vmem:[#allocation26_spill] sm:$0xff] }
 0x1f2   :  { %v1801_v43 = vmax.f32 %v1699_v54, 0.0  ;;  %v1701_v28 = vadd.f32 %v1700_v55, %v1508_v48  ;;  %v1526_v22 = vadd.f32 %v1525_v0, %v4844_v50  ;;  %v4845_v55 = vld [vmem:[#allocation29_spill] sm:$0xff] }
 0x1f3   :  { %v1704_v44 = vpop.f32.mrf.mxu1 }
 0x1f4   :  { %v1845_v26 = vpack.c.bf16 %v1801_v43, %v1799_v39  ;;  %v1802_v29 = vmax.f32 %v1701_v28, 0.0  ;;  %v1705_v3 = vadd.f32 %v1704_v44, %v1512_v6  ;;  %v4846_v39 = vld [vmem:[#allocation30_spill] sm:$0xff]  ;;  %v4847_v44 = vld [vmem:[#allocation37_spill] sm:$0xff] }
 0x1f5   :  { %v1706_v51 = vpop.f32.mrf.mxu1  ;;  %v1345_v43 = vadd.f32 %v4846_v39, %v4845_v55 }
 0x1f6   :  { %v1846_v2 = vpack.c.bf16 %v1802_v29, %v1800_v17  ;;  %v1707_v35 = vadd.f32 %v1706_v51, %v1514_v52  ;;  %v1803_v15 = vmax.f32 %v1705_v3, 0.0  ;;  %v4848_v17 = vld [vmem:[#allocation40_spill] sm:$0xff]  ;;  %v4849_v29 = vld [vmem:[#allocation38_spill] sm:$0xff] }
 0x1f7   :  { %v1708_v45 = vpop.f32.mrf.mxu1 }
 0x1f8   :  { %v1709_v56 = vadd.f32 %v1708_v45, %v1516_v24  ;;  %2091 = vmatprep.mubr.bf16.mxu0 %v1846_v2  ;;  %v1804_v5 = vmax.f32 %v1707_v35, 0.0  ;;  %v4851_v45 = vld [vmem:[#allocation31_spill] sm:$0xff] }
 0x1f9   :  { %v1710_v41 = vpop.f32.mrf.mxu1  ;;  %2092 = vmatmul.mubr.bf16.gmra.mxu0 %v1845_v26  ;;  %v1538_v26 = vadd.f32 %v4848_v17, %v1345_v43  ;;  %v4863_v43 = vld [vmem:[#allocation35_spill] sm:$0xff] }
 0x1fa   :  { %v1805_v25 = vmax.f32 %v1709_v56, 0.0  ;;  %v1711_v63 = vadd.f32 %v1710_v41, %v1518_v49  ;;  %v4852_v49 = vld [vmem:[#allocation32_spill] sm:$0xff] }
 0x1fb   :  { %v1714_v30 = vpop.f32.mrf.mxu1  ;;  %v1355_v35 = vadd.f32 %v4852_v49, %v4851_v45 }
 0x1fc   :  { %v1847_v23 = vpack.c.bf16 %v1805_v25, %v1803_v15  ;;  %v1806_v10 = vmax.f32 %v1711_v63, 0.0  ;;  %v1715_v16 = vadd.f32 %v1714_v30, %v1522_v19  ;;  %v4854_v15 = vld [vmem:[#allocation44_spill] sm:$0xff]  ;;  %v4855_v63 = vld [vmem:[#allocation42_spill] sm:$0xff] }
 0x1fd   :  { %v1716_v18 = vpop.f32.mrf.mxu1  ;;  %v1548_v25 = vadd.f32 %v4854_v15, %v1355_v35 }
 0x1fe   :  { %v1848_v27 = vpack.c.bf16 %v1806_v10, %v1804_v5  ;;  %v1717_v37 = vadd.f32 %v1716_v18, %v1524_v42  ;;  %v1807_v31 = vmax.f32 %v1715_v16, 0.0  ;;  %v4858_v42 = vld [vmem:[#allocation34_spill] sm:$0xff] }
 0x1ff   :  { %v1718_v7 = vpop.f32.mrf.mxu1  ;;  %v1365_v50 = vadd.f32 %v4858_v42, %v4857_v40 }
 0x200   :  { %v1719_v58 = vadd.f32 %v1718_v7, %v1526_v22  ;;  %2099 = vmatprep.mubr.bf16.mxu0 %v1848_v27  ;;  %v1808_v48 = vmax.f32 %v1717_v37, 0.0  ;;  %v4859_v27 = vld [vmem:[#allocation45_spill] sm:$0xff] }
 0x201   :  { %v1720_v59 = vpop.f32.mrf.mxu1  ;;  %2100 = vmatmul.mubr.bf16.gmra.mxu0 %v1847_v23 }
 0x202   :  { %v1809_v20 = vmax.f32 %v1719_v58, 0.0  ;;  %v1721_v38 = vadd.f32 %v1720_v59, %v1528_v14  ;;  %v4860_v14 = vld [vmem:[#allocation48_spill] sm:$0xff]  ;;  %v4861_v58 = vld [vmem:[#allocation46_spill] sm:$0xff]  ;;  %v4862_v59 = vld [vmem:[#allocation47_spill] sm:$0xff] }
 0x203   :  { %v1724_v47 = vpop.f32.mrf.mxu1  ;;  %v1558_v37 = vadd.f32 %v4860_v14, %v1365_v50 }
 0x204   :  { %v1849_v53 = vpack.c.bf16 %v1809_v20, %v1807_v31  ;;  %v1810_v54 = vmax.f32 %v1721_v38, 0.0  ;;  %v1725_v21 = vadd.f32 %v1724_v47, %v4847_v44 }
 0x205   :  { %v1726_v13 = vpop.f32.mrf.mxu1 }
 0x206   :  { %v1850_v28 = vpack.c.bf16 %v1810_v54, %v1808_v48  ;;  %v1727_v4 = vadd.f32 %v1726_v13, %v4849_v29  ;;  %v1811_v32 = vmax.f32 %v1725_v21, 0.0  ;;  %v4866_v29 = vld [vmem:[#allocation52_spill] sm:$0xff] }
 0x207   :  { %v1728_v6 = vpop.f32.mrf.mxu1 }
 0x208   :  { %v1729_v11 = vadd.f32 %v1728_v6, %v4850_v8  ;;  %2107 = vmatprep.mubr.bf16.mxu0 %v1850_v28  ;;  %v1812_v62 = vmax.f32 %v1727_v4, 0.0  ;;  %v4864_v28 = vld [vmem:[#allocation36_spill] sm:$0xff]  ;;  %v4865_v6 = vld [vmem:[#allocation49_spill] sm:$0xff]  ;;  %v4867_v8 = vld [vmem:[#allocation50_spill] sm:$0xff] }
 0x209   :  { %v1730_v57 = vpop.f32.mrf.mxu1  ;;  %2108 = vmatmul.mubr.bf16.gmra.mxu0 %v1849_v53  ;;  %v1375_v44 = vadd.f32 %v4864_v28, %v4863_v43 }
 0x20a   :  { %v1813_v51 = vmax.f32 %v1729_v11, 0.0  ;;  %v1731_v33 = vadd.f32 %v1730_v57, %v1538_v26  ;;  %v4868_v57 = vld [vmem:[#allocation51_spill] sm:$0xff] }
 0x20b   :  { %v1734_v52 = vpop.f32.mrf.mxu1  ;;  %v1568_v4 = vadd.f32 %v4866_v29, %v1375_v44 }
 0x20c   :  { %v1851_v24 = vpack.c.bf16 %v1813_v51, %v1811_v32  ;;  %v1814_v2 = vmax.f32 %v1731_v33, 0.0  ;;  %v1735_v0 = vadd.f32 %v1734_v52, %v4853_v60 }
 0x20d   :  { %v1736_v3 = vpop.f32.mrf.mxu1 }
 0x20e   :  { %v1852_v56 = vpack.c.bf16 %v1814_v2, %v1812_v62  ;;  %v1737_v30 = vadd.f32 %v1736_v3, %v4855_v63  ;;  %v1815_v23 = vmax.f32 %v1735_v0, 0.0 }
 0x20f   :  { %v1738_v41 = vpop.f32.mrf.mxu1 }
 0x210   :  { %v1739_v19 = vadd.f32 %v1738_v41, %v4856_v46  ;;  %2115 = vmatprep.mubr.bf16.mxu0 %v1852_v56  ;;  %v1816_v61 = vmax.f32 %v1737_v30, 0.0 }
 0x211   :  { %v1740_v5 = vpop.f32.mrf.mxu1  ;;  %2116 = vmatmul.mubr.bf16.gmra.mxu0 %v1851_v24 }
 0x212   :  { %v1817_v10 = vmax.f32 %v1739_v19, 0.0  ;;  %v1741_v34 = vadd.f32 %v1740_v5, %v1548_v25 }
 0x213   :  { %v1744_v12 = vpop.f32.mrf.mxu1 }
 0x214   :  { %v1853_v9 = vpack.c.bf16 %v1817_v10, %v1815_v23  ;;  %v1818_v36 = vmax.f32 %v1741_v34, 0.0  ;;  %v1745_v16 = vadd.f32 %v1744_v12, %v4859_v27 }
 0x215   :  { %v1746_v18 = vpop.f32.mrf.mxu1 }
 0x216   :  { %v1854_v22 = vpack.c.bf16 %v1818_v36, %v1816_v61  ;;  %v1747_v1 = vadd.f32 %v1746_v18, %v4861_v58  ;;  %v1819_v38 = vmax.f32 %v1745_v16, 0.0 }
 0x217   :  { %v1748_v7 = vpop.f32.mrf.mxu1 }
 0x218   :  { %v1749_v31 = vadd.f32 %v1748_v7, %v4862_v59  ;;  %2123 = vmatprep.mubr.bf16.mxu0 %v1854_v22  ;;  %v1820_v54 = vmax.f32 %v1747_v1, 0.0 }
 0x219   :  { %v1750_v20 = vpop.f32.mrf.mxu1  ;;  %2124 = vmatmul.mubr.bf16.gmra.mxu0 %v1853_v9 }
 0x21a   :  { %v1821_v47 = vmax.f32 %v1749_v31, 0.0  ;;  %v1751_v48 = vadd.f32 %v1750_v20, %v1558_v37 }
 0x21b   :  { %v1754_v53 = vpop.f32.mrf.mxu1 }
 0x21c   :  { %v1855_v13 = vpack.c.bf16 %v1821_v47, %v1819_v38  ;;  %v1822_v55 = vmax.f32 %v1751_v48, 0.0  ;;  %v1755_v17 = vadd.f32 %v1754_v53, %v4865_v6 }
 0x21d   :  { %v1756_v39 = vpop.f32.mrf.mxu1 }
 0x21e   :  { %v1856_v21 = vpack.c.bf16 %v1822_v55, %v1820_v54  ;;  %v1757_v11 = vadd.f32 %v1756_v39, %v4867_v8  ;;  %v1823_v33 = vmax.f32 %v1755_v17, 0.0 }
 0x21f   :  { %v1758_v26 = vpop.f32.mrf.mxu1 }
 0x220   :  { %v1759_v32 = vadd.f32 %v1758_v26, %v4868_v57  ;;  %2131 = vmatprep.mubr.bf16.mxu0 %v1856_v21  ;;  %v1824_v24 = vmax.f32 %v1757_v11, 0.0 }
 0x221   :  { %v1760_v51 = vpop.f32.mrf.mxu1  ;;  %2132 = vmatmul.mubr.bf16.gmra.mxu0 %v1855_v13 }
 0x222   :  { %v1825_v52 = vmax.f32 %v1759_v32, 0.0  ;;  %v1761_v62 = vadd.f32 %v1760_v51, %v1568_v4 }
 0x224   :  { %v1857_v2 = vpack.c.bf16 %v1825_v52, %v1823_v33  ;;  %v1826_v3 = vmax.f32 %v1761_v62, 0.0 }
 0x226   :  { %v1858_v45 = vpack.c.bf16 %v1826_v3, %v1824_v24 }
 0x228   :  { %2139 = vmatprep.mubr.bf16.mxu0 %v1858_v45 }
 0x229   :  { %2140 = vmatmul.mubr.bf16.gmra.mxu0 %v1857_v2 }
 0x271   :  { %v2898_v49 = vpop.f32.mrf.mxu0 }
 0x273   :  { %v2899_v35 = vpop.f32.mrf.mxu0 }
 0x274   :  { %v2900_v60 = vadd.f32 %v2899_v35, %v2898_v49 }
 0x275   :  { %v2901_v56 = vpop.f32.mrf.mxu0 }
 0x276   :  { %v2148_v25 = vmax.f32 %v2900_v60, 0.0 }
 0x277   :  { %v2902_v0 = vpop.f32.mrf.mxu0 }
 0x278   :  { %v2903_v41 = vadd.f32 %v2902_v0, %v2901_v56 }
 0x279   :  { %v2904_v15 = vpop.f32.mrf.mxu0 }
 0x27a   :  { %v2149_v63 = vmax.f32 %v2903_v41, 0.0 }
 0x27b   :  { %v2905_v30 = vpop.f32.mrf.mxu0 }
 0x27c   :  { %v2180_v46 = vpack.c.bf16 %v2149_v63, %v2148_v25  ;;  %v2906_v5 = vadd.f32 %v2905_v30, %v2904_v15 }
 0x27d   :  { %v2907_v19 = vpop.f32.mrf.mxu0 }
 0x27e   :  { %3034 = vmatprep.mubr.bf16.mxu1 %v2180_v46  ;;  %v2150_v12 = vmax.f32 %v2906_v5, 0.0 }
 0x27f   :  { %v2908_v23 = vpop.f32.mrf.mxu0 }
 0x280   :  { %v2909_v10 = vadd.f32 %v2908_v23, %v2907_v19 }
 0x281   :  { %v2910_v34 = vpop.f32.mrf.mxu0 }
 0x282   :  { %v2151_v61 = vmax.f32 %v2909_v10, 0.0 }
 0x283   :  { %v2911_v9 = vpop.f32.mrf.mxu0 }
 0x284   :  { %v2181_v36 = vpack.c.bf16 %v2151_v61, %v2150_v12  ;;  %v2912_v40 = vadd.f32 %v2911_v9, %v2910_v34 }
 0x285   :  { %v2913_v18 = vpop.f32.mrf.mxu0 }
 0x286   :  { %3035 = vmatmul.mubr.bf16.vlgmr.msra.gmra.mxu1 %v2181_v36  ;;  %v2152_v27 = vmax.f32 %v2912_v40, 0.0 }
 0x287   :  { %v2914_v42 = vpop.f32.mrf.mxu0 }
 0x288   :  { %v2915_v50 = vadd.f32 %v2914_v42, %v2913_v18 }
 0x289   :  { %v2916_v22 = vpop.f32.mrf.mxu0 }
 0x28a   :  { %v2153_v16 = vmax.f32 %v2915_v50, 0.0 }
 0x28b   :  { %v2917_v7 = vpop.f32.mrf.mxu0 }
 0x28c   :  { %v2182_v14 = vpack.c.bf16 %v2153_v16, %v2152_v27  ;;  %v2918_v58 = vadd.f32 %v2917_v7, %v2916_v22 }
 0x28d   :  { %v2919_v37 = vpop.f32.mrf.mxu0 }
 0x28e   :  { %3038 = vmatprep.mubr.bf16.mxu1 %v2182_v14  ;;  %v2154_v20 = vmax.f32 %v2918_v58, 0.0 }
 0x28f   :  { %v2920_v1 = vpop.f32.mrf.mxu0 }
 0x290   :  { %v2921_v59 = vadd.f32 %v2920_v1, %v2919_v37 }
 0x291   :  { %v2922_v31 = vpop.f32.mrf.mxu0 }
 0x292   :  { %v2155_v38 = vmax.f32 %v2921_v59, 0.0 }
 0x293   :  { %v2923_v47 = vpop.f32.mrf.mxu0 }
 0x294   :  { %v2183_v48 = vpack.c.bf16 %v2155_v38, %v2154_v20  ;;  %v2924_v54 = vadd.f32 %v2923_v47, %v2922_v31 }
 0x295   :  { %v2925_v53 = vpop.f32.mrf.mxu0 }
 0x296   :  { %3039 = vmatmul.mubr.bf16.gmra.mxu1 %v2183_v48  ;;  %v2156_v43 = vmax.f32 %v2924_v54, 0.0 }
 0x297   :  { %v2926_v13 = vpop.f32.mrf.mxu0 }
 0x298   :  { %v2927_v55 = vadd.f32 %v2926_v13, %v2925_v53 }
 0x299   :  { %v2928_v39 = vpop.f32.mrf.mxu0 }
 0x29a   :  { %v2157_v28 = vmax.f32 %v2927_v55, 0.0 }
 0x29b   :  { %v2929_v44 = vpop.f32.mrf.mxu0 }
 0x29c   :  { %v2184_v21 = vpack.c.bf16 %v2157_v28, %v2156_v43  ;;  %v2930_v17 = vadd.f32 %v2929_v44, %v2928_v39 }
 0x29d   :  { %v2931_v6 = vpop.f32.mrf.mxu0 }
 0x29e   :  { %3042 = vmatprep.mubr.bf16.mxu1 %v2184_v21  ;;  %v2158_v8 = vmax.f32 %v2930_v17, 0.0 }
 0x29f   :  { %v2932_v26 = vpop.f32.mrf.mxu0 }
 0x2a0   :  { %v2933_v29 = vadd.f32 %v2932_v26, %v2931_v6 }
 0x2a1   :  { %v2934_v4 = vpop.f32.mrf.mxu0 }
 0x2a2   :  { %v2159_v11 = vmax.f32 %v2933_v29, 0.0 }
 0x2a3   :  { %v2935_v57 = vpop.f32.mrf.mxu0 }
 0x2a4   :  { %v2185_v32 = vpack.c.bf16 %v2159_v11, %v2158_v8  ;;  %v2936_v33 = vadd.f32 %v2935_v57, %v2934_v4 }
 0x2a5   :  { %v2937_v51 = vpop.f32.mrf.mxu0 }
 0x2a6   :  { %3043 = vmatmul.mubr.bf16.gmra.mxu1 %v2185_v32  ;;  %v2160_v2 = vmax.f32 %v2936_v33, 0.0 }
 0x2a7   :  { %v2938_v52 = vpop.f32.mrf.mxu0 }
 0x2a8   :  { %v2939_v62 = vadd.f32 %v2938_v52, %v2937_v51 }
 0x2a9   :  { %v2940_v24 = vpop.f32.mrf.mxu0 }
 0x2aa   :  { %v2161_v3 = vmax.f32 %v2939_v62, 0.0 }
 0x2ab   :  { %v2941_v45 = vpop.f32.mrf.mxu0 }
 0x2ac   :  { %v2186_v49 = vpack.c.bf16 %v2161_v3, %v2160_v2  ;;  %v2942_v56 = vadd.f32 %v2941_v45, %v2940_v24 }
 0x2ad   :  { %v2943_v35 = vpop.f32.mrf.mxu0 }
 0x2ae   :  { %3046 = vmatprep.mubr.bf16.mxu1 %v2186_v49  ;;  %v2162_v15 = vmax.f32 %v2942_v56, 0.0 }
 0x2af   :  { %v2944_v60 = vpop.f32.mrf.mxu0 }
 0x2b0   :  { %v2945_v0 = vadd.f32 %v2944_v60, %v2943_v35 }
 0x2b1   :  { %v2946_v41 = vpop.f32.mrf.mxu0 }
 0x2b2   :  { %v2163_v25 = vmax.f32 %v2945_v0, 0.0 }
 0x2b3   :  { %v2947_v63 = vpop.f32.mrf.mxu0 }
 0x2b4   :  { %v2187_v30 = vpack.c.bf16 %v2163_v25, %v2162_v15  ;;  %v2948_v19 = vadd.f32 %v2947_v63, %v2946_v41 }
 0x2b5   :  { %v2949_v46 = vpop.f32.mrf.mxu0 }
 0x2b6   :  { %3047 = vmatmul.mubr.bf16.gmra.mxu1 %v2187_v30  ;;  %v2164_v34 = vmax.f32 %v2948_v19, 0.0 }
 0x2b7   :  { %v2950_v5 = vpop.f32.mrf.mxu0 }
 0x2b8   :  { %v2951_v23 = vadd.f32 %v2950_v5, %v2949_v46 }
 0x2b9   :  { %v2952_v10 = vpop.f32.mrf.mxu0 }
 0x2ba   :  { %v2165_v12 = vmax.f32 %v2951_v23, 0.0 }
 0x2bb   :  { %v2953_v61 = vpop.f32.mrf.mxu0 }
 0x2bc   :  { %v2188_v9 = vpack.c.bf16 %v2165_v12, %v2164_v34  ;;  %v2954_v18 = vadd.f32 %v2953_v61, %v2952_v10 }
 0x2bd   :  { %v2955_v36 = vpop.f32.mrf.mxu0 }
 0x2be   :  { %3050 = vmatprep.mubr.bf16.mxu1 %v2188_v9  ;;  %v2166_v22 = vmax.f32 %v2954_v18, 0.0 }
 0x2bf   :  { %v2956_v40 = vpop.f32.mrf.mxu0 }
 0x2c0   :  { %v2957_v42 = vadd.f32 %v2956_v40, %v2955_v36 }
 0x2c1   :  { %v2958_v50 = vpop.f32.mrf.mxu0 }
 0x2c2   :  { %v2167_v27 = vmax.f32 %v2957_v42, 0.0 }
 0x2c3   :  { %v2959_v16 = vpop.f32.mrf.mxu0 }
 0x2c4   :  { %v2189_v7 = vpack.c.bf16 %v2167_v27, %v2166_v22  ;;  %v2960_v37 = vadd.f32 %v2959_v16, %v2958_v50 }
 0x2c5   :  { %v2961_v14 = vpop.f32.mrf.mxu0 }
 0x2c6   :  { %3051 = vmatmul.mubr.bf16.gmra.mxu1 %v2189_v7  ;;  %v2168_v31 = vmax.f32 %v2960_v37, 0.0 }
 0x2c7   :  { %v2962_v58 = vpop.f32.mrf.mxu0 }
 0x2c8   :  { %v2963_v1 = vadd.f32 %v2962_v58, %v2961_v14 }
 0x2c9   :  { %v2964_v59 = vpop.f32.mrf.mxu0 }
 0x2ca   :  { %v2169_v20 = vmax.f32 %v2963_v1, 0.0 }
 0x2cb   :  { %v2965_v38 = vpop.f32.mrf.mxu0 }
 0x2cc   :  { %v2190_v47 = vpack.c.bf16 %v2169_v20, %v2168_v31  ;;  %v2966_v53 = vadd.f32 %v2965_v38, %v2964_v59 }
 0x2cd   :  { %v2967_v48 = vpop.f32.mrf.mxu0 }
 0x2ce   :  { %3054 = vmatprep.mubr.bf16.mxu1 %v2190_v47  ;;  %v2170_v39 = vmax.f32 %v2966_v53, 0.0 }
 0x2cf   :  { %v2968_v54 = vpop.f32.mrf.mxu0 }
 0x2d0   :  { %v2969_v13 = vadd.f32 %v2968_v54, %v2967_v48 }
 0x2d1   :  { %v2970_v55 = vpop.f32.mrf.mxu0 }
 0x2d2   :  { %v2171_v43 = vmax.f32 %v2969_v13, 0.0 }
 0x2d3   :  { %v2971_v28 = vpop.f32.mrf.mxu0 }
 0x2d4   :  { %v2191_v44 = vpack.c.bf16 %v2171_v43, %v2170_v39  ;;  %v2972_v6 = vadd.f32 %v2971_v28, %v2970_v55 }
 0x2d5   :  { %v2973_v21 = vpop.f32.mrf.mxu0 }
 0x2d6   :  { %3055 = vmatmul.mubr.bf16.gmra.mxu1 %v2191_v44  ;;  %v2172_v4 = vmax.f32 %v2972_v6, 0.0 }
 0x2d7   :  { %v2974_v17 = vpop.f32.mrf.mxu0 }
 0x2d8   :  { %v2975_v26 = vadd.f32 %v2974_v17, %v2973_v21 }
 0x2d9   :  { %v2976_v29 = vpop.f32.mrf.mxu0 }
 0x2da   :  { %v2173_v8 = vmax.f32 %v2975_v26, 0.0 }
 0x2db   :  { %v2977_v11 = vpop.f32.mrf.mxu0 }
 0x2dc   :  { %v2192_v57 = vpack.c.bf16 %v2173_v8, %v2172_v4  ;;  %v2978_v51 = vadd.f32 %v2977_v11, %v2976_v29 }
 0x2dd   :  { %v2979_v32 = vpop.f32.mrf.mxu0 }
 0x2de   :  { %3058 = vmatprep.mubr.bf16.mxu1 %v2192_v57  ;;  %v2174_v24 = vmax.f32 %v2978_v51, 0.0 }
 0x2df   :  { %v2980_v33 = vpop.f32.mrf.mxu0 }
 0x2e0   :  { %v2981_v52 = vadd.f32 %v2980_v33, %v2979_v32 }
 0x2e1   :  { %v2982_v62 = vpop.f32.mrf.mxu0 }
 0x2e2   :  { %v2175_v2 = vmax.f32 %v2981_v52, 0.0 }
 0x2e3   :  { %v2983_v3 = vpop.f32.mrf.mxu0 }
 0x2e4   :  { %v2193_v45 = vpack.c.bf16 %v2175_v2, %v2174_v24  ;;  %v2984_v35 = vadd.f32 %v2983_v3, %v2982_v62 }
 0x2e5   :  { %v2985_v49 = vpop.f32.mrf.mxu0 }
 0x2e6   :  { %3059 = vmatmul.mubr.bf16.gmra.mxu1 %v2193_v45  ;;  %v2176_v41 = vmax.f32 %v2984_v35, 0.0 }
 0x2e7   :  { %v2986_v56 = vpop.f32.mrf.mxu0 }
 0x2e8   :  { %v2987_v60 = vadd.f32 %v2986_v56, %v2985_v49 }
 0x2e9   :  { %v2988_v0 = vpop.f32.mrf.mxu0 }
 0x2ea   :  { %v2177_v15 = vmax.f32 %v2987_v60, 0.0 }
 0x2eb   :  { %v2989_v25 = vpop.f32.mrf.mxu0 }
 0x2ec   :  { %v2194_v63 = vpack.c.bf16 %v2177_v15, %v2176_v41  ;;  %v2990_v46 = vadd.f32 %v2989_v25, %v2988_v0 }
 0x2ed   :  { %v2991_v30 = vpop.f32.mrf.mxu0 }
 0x2ee   :  { %3062 = vmatprep.mubr.bf16.mxu1 %v2194_v63  ;;  %v2178_v23 = vmax.f32 %v2990_v46, 0.0 }
 0x2ef   :  { %v2992_v19 = vpop.f32.mrf.mxu0 }
 0x2f0   :  { %v2993_v5 = vadd.f32 %v2992_v19, %v2991_v30 }
 0x2f2   :  { %v2179_v10 = vmax.f32 %v2993_v5, 0.0 }
 0x2f4   :  { %v2195_v34 = vpack.c.bf16 %v2179_v10, %v2178_v23 }
 0x2f6   :  { %3063 = vmatmul.mubr.bf16.gmra.mxu1 %v2195_v34 }
 0x346   :  { %v3036_v12 = vpop.f32.mrf.mxu1 }
 0x348   :  { %v2294_v61 = vpop.f32.mrf.mxu1 }
 0x34a   :  { %v3037_v9 = vpop.f32.mrf.mxu1 }
 0x34b   :  { %v2795_v36 = vpack.c.bf16 %v3037_v9, %v3036_v12 }
 0x34c   :  { %v2297_v18 = vpop.f32.mrf.mxu1 }
 0x34d   :  { %2867 = vst [vmem:[%s4766_s4 + $0x8] sm:$0xff] %v2795_v36   ;;  %v2790_v40 = vpack.c.bf16 %v2297_v18, %v2294_v61 }
 0x34f   :  { %2791 = vst [vmem:[%s4766_s4] sm:$0xff] %v2790_v40  }
 0x356   :  { %v3040_v42 = vpop.f32.mrf.mxu1 }
 0x358   :  { %v2310_v50 = vpop.f32.mrf.mxu1 }
 0x35a   :  { %v3041_v22 = vpop.f32.mrf.mxu1 }
 0x35b   :  { %v2805_v27 = vpack.c.bf16 %v3041_v22, %v3040_v42 }
 0x35c   :  { %v2313_v16 = vpop.f32.mrf.mxu1 }
 0x35d   :  { %2869 = vst [vmem:[%s4766_s4 + $0x18] sm:$0xff] %v2805_v27   ;;  %v2800_v7 = vpack.c.bf16 %v2313_v16, %v2310_v50 }
 0x35f   :  { %2868 = vst [vmem:[%s4766_s4 + $0x10] sm:$0xff] %v2800_v7  }
 0x366   :  { %v3044_v14 = vpop.f32.mrf.mxu1 }
 0x368   :  { %v2326_v37 = vpop.f32.mrf.mxu1 }
 0x36a   :  { %v3045_v58 = vpop.f32.mrf.mxu1 }
 0x36b   :  { %v2815_v1 = vpack.c.bf16 %v3045_v58, %v3044_v14 }
 0x36c   :  { %v2329_v59 = vpop.f32.mrf.mxu1 }
 0x36d   :  { %2871 = vst [vmem:[%s4766_s4 + $0x28] sm:$0xff] %v2815_v1   ;;  %v2810_v31 = vpack.c.bf16 %v2329_v59, %v2326_v37 }
 0x36f   :  { %2870 = vst [vmem:[%s4766_s4 + $0x20] sm:$0xff] %v2810_v31  }
 0x376   :  { %v3048_v20 = vpop.f32.mrf.mxu1 }
 0x378   :  { %v2342_v38 = vpop.f32.mrf.mxu1 }
 0x37a   :  { %v3049_v47 = vpop.f32.mrf.mxu1 }
 0x37b   :  { %v2825_v48 = vpack.c.bf16 %v3049_v47, %v3048_v20 }
 0x37c   :  { %v2345_v53 = vpop.f32.mrf.mxu1 }
 0x37d   :  { %2873 = vst [vmem:[%s4766_s4 + $0x38] sm:$0xff] %v2825_v48   ;;  %v2820_v54 = vpack.c.bf16 %v2345_v53, %v2342_v38 }
 0x37f   :  { %2872 = vst [vmem:[%s4766_s4 + $0x30] sm:$0xff] %v2820_v54  }
 0x386   :  { %v3052_v13 = vpop.f32.mrf.mxu1 }
 0x388   :  { %v2358_v55 = vpop.f32.mrf.mxu1 }
 0x38a   :  { %v3053_v39 = vpop.f32.mrf.mxu1 }
 0x38b   :  { %v2835_v43 = vpack.c.bf16 %v3053_v39, %v3052_v13 }
 0x38c   :  { %v2361_v28 = vpop.f32.mrf.mxu1 }
 0x38d   :  { %2875 = vst [vmem:[%s4766_s4 + $0x48] sm:$0xff] %v2835_v43   ;;  %v2830_v44 = vpack.c.bf16 %v2361_v28, %v2358_v55 }
 0x38f   :  { %2874 = vst [vmem:[%s4766_s4 + $0x40] sm:$0xff] %v2830_v44  }
 0x396   :  { %v3056_v21 = vpop.f32.mrf.mxu1 }
 0x398   :  { %v2374_v6 = vpop.f32.mrf.mxu1 }
 0x39a   :  { %v3057_v17 = vpop.f32.mrf.mxu1 }
 0x39b   :  { %v2845_v26 = vpack.c.bf16 %v3057_v17, %v3056_v21 }
 0x39c   :  { %v2377_v29 = vpop.f32.mrf.mxu1 }
 0x39d   :  { %2877 = vst [vmem:[%s4766_s4 + $0x58] sm:$0xff] %v2845_v26   ;;  %v2840_v4 = vpack.c.bf16 %v2377_v29, %v2374_v6 }
 0x39f   :  { %2876 = vst [vmem:[%s4766_s4 + $0x50] sm:$0xff] %v2840_v4  }
 0x3a6   :  { %v3060_v8 = vpop.f32.mrf.mxu1 }
 0x3a8   :  { %v2390_v11 = vpop.f32.mrf.mxu1 }
 0x3aa   :  { %v3061_v57 = vpop.f32.mrf.mxu1 }
 0x3ab   :  { %v2855_v32 = vpack.c.bf16 %v3061_v57, %v3060_v8 }
 0x3ac   :  { %v2393_v51 = vpop.f32.mrf.mxu1 }
 0x3ad   :  { %2879 = vst [vmem:[%s4766_s4 + $0x68] sm:$0xff] %v2855_v32   ;;  %v2850_v33 = vpack.c.bf16 %v2393_v51, %v2390_v11 }
 0x3af   :  { %2878 = vst [vmem:[%s4766_s4 + $0x60] sm:$0xff] %v2850_v33  }
 0x3b6   :  { %v3064_v52 = vpop.f32.mrf.mxu1 }
 0x3b8   :  { %v2406_v62 = vpop.f32.mrf.mxu1 }
 0x3ba   :  { %v3065_v24 = vpop.f32.mrf.mxu1 }
 0x3bb   :  { %v2865_v2 = vpack.c.bf16 %v3065_v24, %v3064_v52 }
 0x3bc   :  { %v2409_v3 = vpop.f32.mrf.mxu1 }
 0x3bd   :  { %2881 = vst [vmem:[%s4766_s4 + $0x78] sm:$0xff] %v2865_v2   ;;  %v2860_v45 = vpack.c.bf16 %v2409_v3, %v2406_v62 }
 0x3bf   :  { %2880 = vst [vmem:[%s4766_s4 + $0x70] sm:$0xff] %v2860_v45  }

</bundles_post_ra>
